<compile_context>
chip_gen: v7x
topology: tpu7x:2x2x1
jax: 0.10.0
libtpu: 0.0.40
codegen_flags: <defaults>
</compile_context>

<pallas_src>
import functools

import numpy as np
import jax
import jax.numpy as jnp
from jax import lax
from jax.experimental import pallas as pl
from jax.experimental.pallas import tpu as pltpu

MXU_DTYPE = jnp.bfloat16   # MXU operand dtype; accumulation stays float32.


# --------------------------------------------------------------------------
# Fused kernel.
# --------------------------------------------------------------------------
def _xception_kernel(*refs, layer_meta, N, H, W, Cin, Cout, P, eps):
    """Fully fused Xception block in lane-dense layout.

    refs (in order):
      x_ref                 (N, H, W*Cin)                 f32, unpadded input
      [w_l, b_l] per layer  w_l: (K, Lin_l, Lout_l) bf16  banded conv weights
                            b_l: (1, Lout_l)        f32   bias (margin lanes 0)
      scw_ref               (W*Cin, W*Cout)         bf16  block-diag 1x1 conv
      scb_ref               (1, W*Cout)             f32
      pool_ref              (W*Cout, Cout)          f32   one-hot channel pool
      poolt_ref             (Cout, W*Cout)          f32   channel re-broadcast
      g_ref, beta_ref       (1, Cout)               f32   BN gamma / beta
      o_ref                 (N*H, W*Cout)                 output
      slab_ref              (N, H+2P, (W+2P)*Cin)   f32   VMEM scratch
    layer_meta: tuple of (K, Lin, Lout, m_out) per layer (static).
    """
    L = len(layer_meta)
    x_ref = refs[0]
    w_refs = [refs[1 + 2 * l] for l in range(L)]
    b_refs = [refs[2 + 2 * l] for l in range(L)]
    (scw_ref, scb_ref, pool_ref, poolt_ref, g_ref, beta_ref,
     o_ref, slab_ref) = refs[1 + 2 * L:]

    # ---- layer-0 padded slab built in VMEM (replaces wrapper-side jnp.pad) ----
    slab_ref[...] = jnp.zeros(slab_ref.shape, slab_ref.dtype)
    slab_ref[:, P:P + H, P * Cin:(P + W) * Cin] = x_ref[...]

    cur = slab_ref[...]                       # (N, Hc, Lin_0)  f32
    Hc = H + 2 * P

    for l, (K, Lin, Lout, m_out) in enumerate(layer_meta):
        Ho = Hc - K + 1
        acc = None
        # K row-shifted MXU matmuls; kw-shift + Cin contraction + the layer's
        # zero padding live inside the banded weight matrix, so the result is
        # already lane-dense (Lout = Wo*Cout lanes) -- no im2col concatenate.
        for kh in range(K):
            rows = cur[:, kh:kh + Ho, :].reshape(N * Ho, Lin).astype(MXU_DTYPE)
            d = jnp.dot(rows, w_refs[l][kh],
                        preferred_element_type=jnp.float32)
            acc = d if acc is None else acc + d
        h = jnp.maximum(acc + b_refs[l][...], 0.0).reshape(N, Ho, Lout)
        if m_out > 0:
            # Only intermediate layers carry a margin; W-margin lanes are
            # already zero (banded weights + zeroed bias), so only the H rows
            # need masking to emulate the next layer's zero padding.
            row = lax.broadcasted_iota(jnp.int32, (N, Ho, Lout), 1)
            h = jnp.where((row >= m_out) & (row < m_out + H), h, 0.0)
        cur = h
        Hc = Ho

    conv_out = cur.reshape(N * H, W * Cout)                # f32

    # ---- shortcut: block-diag 1x1 conv + BatchNorm (train-mode batch stats) --
    x2d = x_ref[...].reshape(N * H, W * Cin).astype(MXU_DTYPE)
    s = jnp.dot(x2d, scw_ref[...], preferred_element_type=jnp.float32)
    s = s + scb_ref[...]                                   # (N*H, W*Cout) f32

    cnt = float(N * H * W)
    row_sum = jnp.sum(s, axis=0, keepdims=True)            # (1, W*Cout)
    row_sq = jnp.sum(s * s, axis=0, keepdims=True)         # single pass
    chan_sum = jnp.dot(row_sum, pool_ref[...], preferred_element_type=jnp.float32)
    chan_sq = jnp.dot(row_sq, pool_ref[...], preferred_element_type=jnp.float32)
    mean = chan_sum / cnt                                  # (1, Cout)
    var = chan_sq / cnt - mean * mean                      # biased var, f32
    scale = g_ref[...] * lax.rsqrt(var + eps)              # (1, Cout)
    shift = beta_ref[...] - mean * scale
    scale_row = jnp.dot(scale, poolt_ref[...], preferred_element_type=jnp.float32)
    shift_row = jnp.dot(shift, poolt_ref[...], preferred_element_type=jnp.float32)
    s = s * scale_row + shift_row

    # ---- residual add + final ReLU, lane-dense store ----
    o_ref[...] = jnp.maximum(conv_out + s, 0.0).astype(o_ref.dtype)


def _full_block_spec(a):
    nd = a.ndim
    if nd == 2:
        return pl.BlockSpec(a.shape, lambda i: (0, 0))
    if nd == 3:
        return pl.BlockSpec(a.shape, lambda i: (0, 0, 0))
    raise ValueError(f"unexpected rank {nd}")


# --------------------------------------------------------------------------
# Module wrapper
# --------------------------------------------------------------------------
class XceptionBlockPallas:
    def __init__(self, key, in_ch, filters, kernel_sizes, padding, bn_eps=1e-5):
        assert len(filters) == len(kernel_sizes)
        self.in_ch = in_ch
        self.filters = list(filters)
        self.kernel_sizes = list(kernel_sizes)
        self.paddings = [padding] * len(filters)
        for k, p in zip(kernel_sizes, self.paddings):
            assert k == 2 * p + 1, "residual add requires per-layer 'same' convs"
        self.bn_eps = bn_eps
        self.P = sum(self.paddings)

        keys = jax.random.split(key, 2 * len(filters) + 2)
        self.conv_params = []       # HWIO weights + bias (pure-JAX reference)
        c_prev = in_ch
        for i, (c_out, k) in enumerate(zip(filters, kernel_sizes)):
            w = 0.1 * jax.random.normal(keys[2 * i], (k, k, c_prev, c_out),
                                        jnp.float32)
            b = 0.1 * jax.random.normal(keys[2 * i + 1], (c_out,), jnp.float32)
            self.conv_params.append((w, b))
            c_prev = c_out

        c_sc = filters[-1]
        self.sc_w = 0.1 * jax.random.normal(keys[-2], (in_ch, c_sc), jnp.float32)
        self.sc_b = 0.1 * jax.random.normal(keys[-1], (c_sc,), jnp.float32)
        self.gamma = jnp.ones((c_sc,), jnp.float32)   # BatchNorm2d default init
        self.beta = jnp.zeros((c_sc,), jnp.float32)

        self._packed_cache = {}   # (H, W) -> lane-dense packed operands

    # -------- host-side packing: banded / block-diagonal weight matrices ----
    def _pack(self, H, W):
        cache_key = (H, W)
        if cache_key in self._packed_cache:
            return self._packed_cache[cache_key]
        P, Cin, Cout = self.P, self.in_ch, self.filters[-1]

        layer_meta, w_list, b_list = [], [], []
        margin, Wc, c_prev = P, W + 2 * P, Cin
        for (w, b), k, p in zip(self.conv_params, self.kernel_sizes,
                                self.paddings):
            co = int(w.shape[-1])
            Wo = Wc - k + 1
            m_out = margin - p
            assert m_out >= 0
            wn = np.asarray(w, np.float32)
            bn_ = np.asarray(b, np.float32)
            band = np.zeros((k, Wc * c_prev, Wo * co), np.float32)
            brow = np.zeros((1, Wo * co), np.float32)
            for kh in range(k):
                for w_out in range(m_out, m_out + W):     # real columns only
                    for kw in range(k):
                        w_in = w_out + kw
                        band[kh,
                             w_in * c_prev:(w_in + 1) * c_prev,
                             w_out * co:(w_out + 1) * co] = wn[kh, kw]
            for w_out in range(m_out, m_out + W):
                brow[0, w_out * co:(w_out + 1) * co] = bn_
            w_list.append(jnp.asarray(band, MXU_DTYPE))
            b_list.append(jnp.asarray(brow, jnp.float32))
            layer_meta.append((k, Wc * c_prev, Wo * co, m_out))
            Wc, c_prev, margin = Wo, co, m_out
        assert Wc == W and margin == 0

        # shortcut 1x1 conv as a block-diagonal lane-dense matrix
        scw = np.asarray(self.sc_w, np.float32)
        scb = np.asarray(self.sc_b, np.float32)
        scd = np.zeros((W * Cin, W * Cout), np.float32)
        scb_row = np.zeros((1, W * Cout), np.float32)
        pool = np.zeros((W * Cout, Cout), np.float32)
        eye = np.eye(Cout, dtype=np.float32)
        for wpos in range(W):
            scd[wpos * Cin:(wpos + 1) * Cin, wpos * Cout:(wpos + 1) * Cout] = scw
            scb_row[0, wpos * Cout:(wpos + 1) * Cout] = scb
            pool[wpos * Cout:(wpos + 1) * Cout, :] = eye

        packed = dict(
            layer_meta=tuple(layer_meta), w_list=w_list, b_list=b_list,
            scw=jnp.asarray(scd, MXU_DTYPE), scb=jnp.asarray(scb_row),
            pool=jnp.asarray(pool), poolt=jnp.asarray(np.ascontiguousarray(pool.T)),
            gamma=self.gamma.reshape(1, Cout), beta=self.beta.reshape(1, Cout))
        self._packed_cache[cache_key] = packed
        return packed

    # -------- fused forward ----
    def __call__(self, x_nchw):
        N, Cin, H, W = x_nchw.shape
        assert Cin == self.in_ch
        Cout, P = self.filters[-1], self.P
        pk = self._pack(H, W)

        # single relayout pass: NCHW -> lane-dense (N, H, W*Cin)
        x = jnp.transpose(x_nchw, (0, 2, 3, 1)).reshape(N, H, W * Cin)

        kern = functools.partial(
            _xception_kernel, layer_meta=pk["layer_meta"],
            N=N, H=H, W=W, Cin=Cin, Cout=Cout, P=P, eps=self.bn_eps)

        ins = [x]
        for wl, bl in zip(pk["w_list"], pk["b_list"]):
            ins += [wl, bl]
        ins += [pk["scw"], pk["scb"], pk["pool"], pk["poolt"],
                pk["gamma"], pk["beta"]]
        in_specs = [_full_block_spec(a) for a in ins]

        out2d = pl.pallas_call(
            kern,
            out_shape=jax.ShapeDtypeStruct((N * H, W * Cout), jnp.float32),
            grid=(1,),   # BN needs full-batch statistics; single fused step here.
            in_specs=in_specs,
            out_specs=pl.BlockSpec((N * H, W * Cout), lambda i: (0, 0)),
            scratch_shapes=[pltpu.VMEM((N, H + 2 * P, (W + 2 * P) * Cin),
                                       jnp.float32)],
            compiler_params=pltpu.CompilerParams(
                dimension_semantics=("arbitrary",),
                vmem_limit_bytes=32 * 1024 * 1024),
        )(*ins)

        out = out2d.reshape(N, H, W, Cout)
        return jnp.transpose(out, (0, 3, 1, 2))            # lane-dense -> NCHW

    # -------- pure-JAX reference (same MXU operand dtype) ----
    def reference(self, x_nchw):
        x = jnp.transpose(x_nchw, (0, 2, 3, 1))
        h = x
        for (w, b), p in zip(self.conv_params, self.paddings):
            h = lax.conv_general_dilated(
                h.astype(MXU_DTYPE), w.astype(MXU_DTYPE), (1, 1),
                [(p, p), (p, p)], dimension_numbers=("NHWC", "HWIO", "NHWC"),
                preferred_element_type=jnp.float32) + b
            h = jnp.maximum(h, 0.0)
        cin, cout = self.sc_w.shape
        s = lax.conv_general_dilated(
            x.astype(MXU_DTYPE),
            self.sc_w.reshape(1, 1, cin, cout).astype(MXU_DTYPE),
            (1, 1), [(0, 0), (0, 0)],
            dimension_numbers=("NHWC", "HWIO", "NHWC"),
            preferred_element_type=jnp.float32) + self.sc_b
        mean = s.mean(axis=(0, 1, 2))
        var = ((s - mean) ** 2).mean(axis=(0, 1, 2))
        s = (s - mean) * lax.rsqrt(var + self.bn_eps) * self.gamma + self.beta
        out = jnp.maximum(h + s, 0.0)
        return jnp.transpose(out, (0, 3, 1, 2))


if __name__ == "__main__":
    key = jax.random.PRNGKey(0)
    kp, kx = jax.random.split(key)

    N, Cin, H, W = 2, 4, 16, 16
    filters = [8, 8]
    kernel_sizes = [3, 3]
    padding = 1

    block = XceptionBlockPallas(kp, Cin, filters, kernel_sizes, padding)
    x = jax.random.normal(kx, (N, Cin, H, W), jnp.float32)

    out = jax.block_until_ready(block(x))
    ref = jax.block_until_ready(block.reference(x))

    assert out.shape == (N, filters[-1], H, W)
    err = float(jnp.max(jnp.abs(out - ref)))
    assert jnp.allclose(out, ref, rtol=1e-3, atol=1e-3), f"max abs diff {err}"

    print("KERNEL_OK")
</pallas_src>

<mosaic_0001>
module attributes {stable_mosaic.version = 11 : i64} {
  func.func @_xception_kernel(%arg0: i32, %arg1: memref<2x16x64xf32, #tpu.memory_space<vmem>>, %arg2: memref<3x80x144xbf16, #tpu.memory_space<vmem>>, %arg3: memref<1x144xf32, #tpu.memory_space<vmem>>, %arg4: memref<3x144x128xbf16, #tpu.memory_space<vmem>>, %arg5: memref<1x128xf32, #tpu.memory_space<vmem>>, %arg6: memref<64x128xbf16, #tpu.memory_space<vmem>>, %arg7: memref<1x128xf32, #tpu.memory_space<vmem>>, %arg8: memref<128x8xf32, #tpu.memory_space<vmem>>, %arg9: memref<8x128xf32, #tpu.memory_space<vmem>>, %arg10: memref<1x8xf32, #tpu.memory_space<vmem>>, %arg11: memref<1x8xf32, #tpu.memory_space<vmem>>, %arg12: memref<32x128xf32, #tpu.memory_space<vmem>>, %arg13: memref<2x20x80xf32, #tpu.memory_space<vmem>>) attributes {dimension_semantics = [#tpu.dimension_semantics<arbitrary>], iteration_bounds = array<i64: 1>, scalar_prefetch = 0 : i64, scratch_operands = 1 : i64, tpu.core_type = #tpu.core_type<tc>, window_params = [{pipeline_mode = #tpu.pipeline_mode<synchronous>, transform_indices = @transform_0, window_bounds = array<i64: 2, 16, 64>}, {pipeline_mode = #tpu.pipeline_mode<synchronous>, transform_indices = @transform_1, window_bounds = array<i64: 3, 80, 144>}, {pipeline_mode = #tpu.pipeline_mode<synchronous>, transform_indices = @transform_2, window_bounds = array<i64: 1, 144>}, {pipeline_mode = #tpu.pipeline_mode<synchronous>, transform_indices = @transform_3, window_bounds = array<i64: 3, 144, 128>}, {pipeline_mode = #tpu.pipeline_mode<synchronous>, transform_indices = @transform_4, window_bounds = array<i64: 1, 128>}, {pipeline_mode = #tpu.pipeline_mode<synchronous>, transform_indices = @transform_5, window_bounds = array<i64: 64, 128>}, {pipeline_mode = #tpu.pipeline_mode<synchronous>, transform_indices = @transform_6, window_bounds = array<i64: 1, 128>}, {pipeline_mode = #tpu.pipeline_mode<synchronous>, transform_indices = @transform_7, window_bounds = array<i64: 128, 8>}, {pipeline_mode = #tpu.pipeline_mode<synchronous>, transform_indices = @transform_8, window_bounds = array<i64: 8, 128>}, {pipeline_mode = #tpu.pipeline_mode<synchronous>, transform_indices = @transform_9, window_bounds = array<i64: 1, 8>}, {pipeline_mode = #tpu.pipeline_mode<synchronous>, transform_indices = @transform_10, window_bounds = array<i64: 1, 8>}, {pipeline_mode = #tpu.pipeline_mode<synchronous>, transform_indices = @transform_11, window_bounds = array<i64: 32, 128>}]} {
    %cst = arith.constant 0.000000e+00 : f32
    %0 = vector.broadcast %cst : f32 to vector<2x20x80xf32>
    %c0 = arith.constant 0 : index
    %c0_0 = arith.constant 0 : index
    %c0_1 = arith.constant 0 : index
    %1 = vector.load %arg13[%c0, %c0_0, %c0_1] : memref<2x20x80xf32, #tpu.memory_space<vmem>>, vector<2x20x80xf32>
    tpu.vector_store %arg13[%c0, %c0_0, %c0_1], %0 {strides = array<i32>} : memref<2x20x80xf32, #tpu.memory_space<vmem>>, vector<2x20x80xf32>,
    %c0_2 = arith.constant 0 : index
    %c0_3 = arith.constant 0 : index
    %c0_4 = arith.constant 0 : index
    %2 = vector.load %arg1[%c0_2, %c0_3, %c0_4] : memref<2x16x64xf32, #tpu.memory_space<vmem>>, vector<2x16x64xf32>
    %c0_5 = arith.constant 0 : index
    %c2 = arith.constant 2 : index
    %c8 = arith.constant 8 : index
    %3 = vector.load %arg13[%c0_5, %c2, %c8] : memref<2x20x80xf32, #tpu.memory_space<vmem>>, vector<2x16x64xf32>
    tpu.vector_store %arg13[%c0_5, %c2, %c8], %2 {strides = array<i32>} : memref<2x20x80xf32, #tpu.memory_space<vmem>>, vector<2x16x64xf32>,
    %c0_6 = arith.constant 0 : index
    %c0_7 = arith.constant 0 : index
    %c0_8 = arith.constant 0 : index
    %4 = vector.load %arg13[%c0_6, %c0_7, %c0_8] : memref<2x20x80xf32, #tpu.memory_space<vmem>>, vector<2x20x80xf32>
    %5 = vector.extract_strided_slice %4 {offsets = [0, 0, 0], sizes = [2, 18, 80], strides = [1, 1, 1]} : vector<2x20x80xf32> to vector<2x18x80xf32>
    %6 = vector.shape_cast %5 : vector<2x18x80xf32> to vector<36x80xf32>
    %7 = arith.truncf %6 : vector<36x80xf32> to vector<36x80xbf16>
    %c0_9 = arith.constant 0 : index
    %c0_10 = arith.constant 0 : index
    %c0_11 = arith.constant 0 : index
    %8 = vector.load %arg2[%c0_9, %c0_10, %c0_11] : memref<3x80x144xbf16, #tpu.memory_space<vmem>>, vector<1x80x144xbf16>
    %9 = vector.shape_cast %8 : vector<1x80x144xbf16> to vector<80x144xbf16>
    %cst_12 = arith.constant dense<0.000000e+00> : vector<36x144xf32>
    %10 = tpu.matmul %7, %9, %cst_12 {dimension_numbers = #tpu.dot_dimension_numbers<[1], [0], [0], [1], [0, 0, 1, 1], [], []>} : vector<36x80xbf16>, vector<80x144xbf16>, vector<36x144xf32> -> vector<36x144xf32>
    %11 = vector.extract_strided_slice %4 {offsets = [0, 1, 0], sizes = [2, 18, 80], strides = [1, 1, 1]} : vector<2x20x80xf32> to vector<2x18x80xf32>
    %12 = vector.shape_cast %11 : vector<2x18x80xf32> to vector<36x80xf32>
    %13 = arith.truncf %12 : vector<36x80xf32> to vector<36x80xbf16>
    %c1 = arith.constant 1 : index
    %c0_13 = arith.constant 0 : index
    %c0_14 = arith.constant 0 : index
    %14 = vector.load %arg2[%c1, %c0_13, %c0_14] : memref<3x80x144xbf16, #tpu.memory_space<vmem>>, vector<1x80x144xbf16>
    %15 = vector.shape_cast %14 : vector<1x80x144xbf16> to vector<80x144xbf16>
    %cst_15 = arith.constant dense<0.000000e+00> : vector<36x144xf32>
    %16 = tpu.matmul %13, %15, %cst_15 {dimension_numbers = #tpu.dot_dimension_numbers<[1], [0], [0], [1], [0, 0, 1, 1], [], []>} : vector<36x80xbf16>, vector<80x144xbf16>, vector<36x144xf32> -> vector<36x144xf32>
    %17 = arith.addf %10, %16 : vector<36x144xf32>
    %18 = vector.extract_strided_slice %4 {offsets = [0, 2, 0], sizes = [2, 18, 80], strides = [1, 1, 1]} : vector<2x20x80xf32> to vector<2x18x80xf32>
    %19 = vector.shape_cast %18 : vector<2x18x80xf32> to vector<36x80xf32>
    %20 = arith.truncf %19 : vector<36x80xf32> to vector<36x80xbf16>
    %c2_16 = arith.constant 2 : index
    %c0_17 = arith.constant 0 : index
    %c0_18 = arith.constant 0 : index
    %21 = vector.load %arg2[%c2_16, %c0_17, %c0_18] : memref<3x80x144xbf16, #tpu.memory_space<vmem>>, vector<1x80x144xbf16>
    %22 = vector.shape_cast %21 : vector<1x80x144xbf16> to vector<80x144xbf16>
    %cst_19 = arith.constant dense<0.000000e+00> : vector<36x144xf32>
    %23 = tpu.matmul %20, %22, %cst_19 {dimension_numbers = #tpu.dot_dimension_numbers<[1], [0], [0], [1], [0, 0, 1, 1], [], []>} : vector<36x80xbf16>, vector<80x144xbf16>, vector<36x144xf32> -> vector<36x144xf32>
    %24 = arith.addf %17, %23 : vector<36x144xf32>
    %c0_20 = arith.constant 0 : index
    %c0_21 = arith.constant 0 : index
    %25 = vector.load %arg3[%c0_20, %c0_21] : memref<1x144xf32, #tpu.memory_space<vmem>>, vector<1x144xf32>
    %26 = vector.broadcast %25 : vector<1x144xf32> to vector<36x144xf32>
    %27 = arith.addf %24, %26 : vector<36x144xf32>
    %cst_22 = arith.constant 0.000000e+00 : f32
    %28 = vector.broadcast %cst_22 : f32 to vector<36x144xf32>
    %29 = arith.maximumf %27, %28 : vector<36x144xf32>
    %30 = vector.shape_cast %29 : vector<36x144xf32> to vector<2x18x144xf32>
    %31 = tpu.iota {dimensions = array<i32: 1>} : vector<2x18x144xi32>
    %c1_i32 = arith.constant 1 : i32
    %32 = vector.broadcast %c1_i32 : i32 to vector<2x18x144xi32>
    %33 = arith.cmpi sge, %31, %32 : vector<2x18x144xi32>
    %c17_i32 = arith.constant 17 : i32
    %34 = vector.broadcast %c17_i32 : i32 to vector<2x18x144xi32>
    %35 = arith.cmpi slt, %31, %34 : vector<2x18x144xi32>
    %36 = arith.andi %33, %35 : vector<2x18x144xi1>
    %cst_23 = arith.constant 0.000000e+00 : f32
    %37 = vector.broadcast %cst_23 : f32 to vector<2x18x144xf32>
    %38 = arith.select %36, %30, %37 : vector<2x18x144xi1>, vector<2x18x144xf32>
    %39 = vector.extract_strided_slice %38 {offsets = [0, 0, 0], sizes = [2, 16, 144], strides = [1, 1, 1]} : vector<2x18x144xf32> to vector<2x16x144xf32>
    %40 = vector.shape_cast %39 : vector<2x16x144xf32> to vector<32x144xf32>
    %41 = arith.truncf %40 : vector<32x144xf32> to vector<32x144xbf16>
    %c0_24 = arith.constant 0 : index
    %c0_25 = arith.constant 0 : index
    %c0_26 = arith.constant 0 : index
    %42 = vector.load %arg4[%c0_24, %c0_25, %c0_26] : memref<3x144x128xbf16, #tpu.memory_space<vmem>>, vector<1x144x128xbf16>
    %43 = vector.shape_cast %42 : vector<1x144x128xbf16> to vector<144x128xbf16>
    %cst_27 = arith.constant dense<0.000000e+00> : vector<32x128xf32>
    %44 = tpu.matmul %41, %43, %cst_27 {dimension_numbers = #tpu.dot_dimension_numbers<[1], [0], [0], [1], [0, 0, 1, 1], [], []>} : vector<32x144xbf16>, vector<144x128xbf16>, vector<32x128xf32> -> vector<32x128xf32>
    %45 = vector.extract_strided_slice %38 {offsets = [0, 1, 0], sizes = [2, 16, 144], strides = [1, 1, 1]} : vector<2x18x144xf32> to vector<2x16x144xf32>
    %46 = vector.shape_cast %45 : vector<2x16x144xf32> to vector<32x144xf32>
    %47 = arith.truncf %46 : vector<32x144xf32> to vector<32x144xbf16>
    %c1_28 = arith.constant 1 : index
    %c0_29 = arith.constant 0 : index
    %c0_30 = arith.constant 0 : index
    %48 = vector.load %arg4[%c1_28, %c0_29, %c0_30] : memref<3x144x128xbf16, #tpu.memory_space<vmem>>, vector<1x144x128xbf16>
    %49 = vector.shape_cast %48 : vector<1x144x128xbf16> to vector<144x128xbf16>
    %cst_31 = arith.constant dense<0.000000e+00> : vector<32x128xf32>
    %50 = tpu.matmul %47, %49, %cst_31 {dimension_numbers = #tpu.dot_dimension_numbers<[1], [0], [0], [1], [0, 0, 1, 1], [], []>} : vector<32x144xbf16>, vector<144x128xbf16>, vector<32x128xf32> -> vector<32x128xf32>
    %51 = arith.addf %44, %50 : vector<32x128xf32>
    %52 = vector.extract_strided_slice %38 {offsets = [0, 2, 0], sizes = [2, 16, 144], strides = [1, 1, 1]} : vector<2x18x144xf32> to vector<2x16x144xf32>
    %53 = vector.shape_cast %52 : vector<2x16x144xf32> to vector<32x144xf32>
    %54 = arith.truncf %53 : vector<32x144xf32> to vector<32x144xbf16>
    %c2_32 = arith.constant 2 : index
    %c0_33 = arith.constant 0 : index
    %c0_34 = arith.constant 0 : index
    %55 = vector.load %arg4[%c2_32, %c0_33, %c0_34] : memref<3x144x128xbf16, #tpu.memory_space<vmem>>, vector<1x144x128xbf16>
    %56 = vector.shape_cast %55 : vector<1x144x128xbf16> to vector<144x128xbf16>
    %cst_35 = arith.constant dense<0.000000e+00> : vector<32x128xf32>
    %57 = tpu.matmul %54, %56, %cst_35 {dimension_numbers = #tpu.dot_dimension_numbers<[1], [0], [0], [1], [0, 0, 1, 1], [], []>} : vector<32x144xbf16>, vector<144x128xbf16>, vector<32x128xf32> -> vector<32x128xf32>
    %58 = arith.addf %51, %57 : vector<32x128xf32>
    %c0_36 = arith.constant 0 : index
    %c0_37 = arith.constant 0 : index
    %59 = vector.load %arg5[%c0_36, %c0_37] : memref<1x128xf32, #tpu.memory_space<vmem>>, vector<1x128xf32>
    %60 = vector.broadcast %59 : vector<1x128xf32> to vector<32x128xf32>
    %61 = arith.addf %58, %60 : vector<32x128xf32>
    %cst_38 = arith.constant 0.000000e+00 : f32
    %62 = vector.broadcast %cst_38 : f32 to vector<32x128xf32>
    %63 = arith.maximumf %61, %62 : vector<32x128xf32>
    %64 = vector.shape_cast %63 : vector<32x128xf32> to vector<2x16x128xf32>
    %65 = vector.shape_cast %64 : vector<2x16x128xf32> to vector<32x128xf32>
    %c0_39 = arith.constant 0 : index
    %c0_40 = arith.constant 0 : index
    %c0_41 = arith.constant 0 : index
    %66 = vector.load %arg1[%c0_39, %c0_40, %c0_41] : memref<2x16x64xf32, #tpu.memory_space<vmem>>, vector<2x16x64xf32>
    %67 = vector.shape_cast %66 : vector<2x16x64xf32> to vector<32x64xf32>
    %68 = arith.truncf %67 : vector<32x64xf32> to vector<32x64xbf16>
    %c0_42 = arith.constant 0 : index
    %c0_43 = arith.constant 0 : index
    %69 = vector.load %arg6[%c0_42, %c0_43] : memref<64x128xbf16, #tpu.memory_space<vmem>>, vector<64x128xbf16>
    %cst_44 = arith.constant dense<0.000000e+00> : vector<32x128xf32>
    %70 = tpu.matmul %68, %69, %cst_44 {dimension_numbers = #tpu.dot_dimension_numbers<[1], [0], [0], [1], [0, 0, 1, 1], [], []>} : vector<32x64xbf16>, vector<64x128xbf16>, vector<32x128xf32> -> vector<32x128xf32>
    %c0_45 = arith.constant 0 : index
    %c0_46 = arith.constant 0 : index
    %71 = vector.load %arg7[%c0_45, %c0_46] : memref<1x128xf32, #tpu.memory_space<vmem>>, vector<1x128xf32>
    %72 = vector.broadcast %71 : vector<1x128xf32> to vector<32x128xf32>
    %73 = arith.addf %70, %72 : vector<32x128xf32>
    %cst_47 = arith.constant dense<0.000000e+00> : vector<128xf32>
    %74 = vector.multi_reduction <add>, %73, %cst_47 [0] : vector<32x128xf32> to vector<128xf32>
    %75 = vector.shape_cast %74 : vector<128xf32> to vector<1x128xf32>
    %76 = arith.mulf %73, %73 : vector<32x128xf32>
    %cst_48 = arith.constant dense<0.000000e+00> : vector<128xf32>
    %77 = vector.multi_reduction <add>, %76, %cst_48 [0] : vector<32x128xf32> to vector<128xf32>
    %78 = vector.shape_cast %77 : vector<128xf32> to vector<1x128xf32>
    %c0_49 = arith.constant 0 : index
    %c0_50 = arith.constant 0 : index
    %79 = vector.load %arg8[%c0_49, %c0_50] : memref<128x8xf32, #tpu.memory_space<vmem>>, vector<128x8xf32>
    %cst_51 = arith.constant dense<0.000000e+00> : vector<1x8xf32>
    %80 = tpu.matmul %75, %79, %cst_51 {dimension_numbers = #tpu.dot_dimension_numbers<[1], [0], [0], [1], [0, 0, 1, 1], [], []>} : vector<1x128xf32>, vector<128x8xf32>, vector<1x8xf32> -> vector<1x8xf32>
    %c0_52 = arith.constant 0 : index
    %c0_53 = arith.constant 0 : index
    %81 = vector.load %arg8[%c0_52, %c0_53] : memref<128x8xf32, #tpu.memory_space<vmem>>, vector<128x8xf32>
    %cst_54 = arith.constant dense<0.000000e+00> : vector<1x8xf32>
    %82 = tpu.matmul %78, %81, %cst_54 {dimension_numbers = #tpu.dot_dimension_numbers<[1], [0], [0], [1], [0, 0, 1, 1], [], []>} : vector<1x128xf32>, vector<128x8xf32>, vector<1x8xf32> -> vector<1x8xf32>
    %cst_55 = arith.constant 5.120000e+02 : f32
    %83 = vector.broadcast %cst_55 : f32 to vector<1x8xf32>
    %84 = arith.divf %80, %83 : vector<1x8xf32>
    %cst_56 = arith.constant 5.120000e+02 : f32
    %85 = vector.broadcast %cst_56 : f32 to vector<1x8xf32>
    %86 = arith.divf %82, %85 : vector<1x8xf32>
    %87 = arith.mulf %84, %84 : vector<1x8xf32>
    %88 = arith.subf %86, %87 : vector<1x8xf32>
    %c0_57 = arith.constant 0 : index
    %c0_58 = arith.constant 0 : index
    %89 = vector.load %arg10[%c0_57, %c0_58] : memref<1x8xf32, #tpu.memory_space<vmem>>, vector<1x8xf32>
    %cst_59 = arith.constant 9.99999974E-6 : f32
    %90 = vector.broadcast %cst_59 : f32 to vector<1x8xf32>
    %91 = arith.addf %88, %90 : vector<1x8xf32>
    %92 = math.rsqrt %91 : vector<1x8xf32>
    %93 = arith.mulf %89, %92 : vector<1x8xf32>
    %c0_60 = arith.constant 0 : index
    %c0_61 = arith.constant 0 : index
    %94 = vector.load %arg11[%c0_60, %c0_61] : memref<1x8xf32, #tpu.memory_space<vmem>>, vector<1x8xf32>
    %95 = arith.mulf %84, %93 : vector<1x8xf32>
    %96 = arith.subf %94, %95 : vector<1x8xf32>
    %c0_62 = arith.constant 0 : index
    %c0_63 = arith.constant 0 : index
    %97 = vector.load %arg9[%c0_62, %c0_63] : memref<8x128xf32, #tpu.memory_space<vmem>>, vector<8x128xf32>
    %cst_64 = arith.constant dense<0.000000e+00> : vector<1x128xf32>
    %98 = tpu.matmul %93, %97, %cst_64 {dimension_numbers = #tpu.dot_dimension_numbers<[1], [0], [0], [1], [0, 0, 1, 1], [], []>} : vector<1x8xf32>, vector<8x128xf32>, vector<1x128xf32> -> vector<1x128xf32>
    %c0_65 = arith.constant 0 : index
    %c0_66 = arith.constant 0 : index
    %99 = vector.load %arg9[%c0_65, %c0_66] : memref<8x128xf32, #tpu.memory_space<vmem>>, vector<8x128xf32>
    %cst_67 = arith.constant dense<0.000000e+00> : vector<1x128xf32>
    %100 = tpu.matmul %96, %99, %cst_67 {dimension_numbers = #tpu.dot_dimension_numbers<[1], [0], [0], [1], [0, 0, 1, 1], [], []>} : vector<1x8xf32>, vector<8x128xf32>, vector<1x128xf32> -> vector<1x128xf32>
    %101 = vector.broadcast %98 : vector<1x128xf32> to vector<32x128xf32>
    %102 = arith.mulf %73, %101 : vector<32x128xf32>
    %103 = vector.broadcast %100 : vector<1x128xf32> to vector<32x128xf32>
    %104 = arith.addf %102, %103 : vector<32x128xf32>
    %105 = arith.addf %65, %104 : vector<32x128xf32>
    %cst_68 = arith.constant 0.000000e+00 : f32
    %106 = vector.broadcast %cst_68 : f32 to vector<32x128xf32>
    %107 = arith.maximumf %105, %106 : vector<32x128xf32>
    %c0_69 = arith.constant 0 : index
    %c0_70 = arith.constant 0 : index
    %108 = vector.load %arg12[%c0_69, %c0_70] : memref<32x128xf32, #tpu.memory_space<vmem>>, vector<32x128xf32>
    tpu.vector_store %arg12[%c0_69, %c0_70], %107 {strides = array<i32>} : memref<32x128xf32, #tpu.memory_space<vmem>>, vector<32x128xf32>,
    return
  }
  func.func @transform_0(%arg0: i32) -> (i32, i32, i32) {
    %c0_i32 = arith.constant 0 : i32
    %c0_i32_0 = arith.constant 0 : i32
    %c0_i32_1 = arith.constant 0 : i32
    %c0_i32_2 = arith.constant 0 : i32
    return %c0_i32, %c0_i32_0, %c0_i32_1 : i32, i32, i32
  }
  func.func @transform_1(%arg0: i32) -> (i32, i32, i32) {
    %c0_i32 = arith.constant 0 : i32
    %c0_i32_0 = arith.constant 0 : i32
    %c0_i32_1 = arith.constant 0 : i32
    %c0_i32_2 = arith.constant 0 : i32
    return %c0_i32, %c0_i32_0, %c0_i32_1 : i32, i32, i32
  }
  func.func @transform_2(%arg0: i32) -> (i32, i32) {
    %c0_i32 = arith.constant 0 : i32
    %c0_i32_0 = arith.constant 0 : i32
    %c0_i32_1 = arith.constant 0 : i32
    return %c0_i32, %c0_i32_0 : i32, i32
  }
  func.func @transform_3(%arg0: i32) -> (i32, i32, i32) {
    %c0_i32 = arith.constant 0 : i32
    %c0_i32_0 = arith.constant 0 : i32
    %c0_i32_1 = arith.constant 0 : i32
    %c0_i32_2 = arith.constant 0 : i32
    return %c0_i32, %c0_i32_0, %c0_i32_1 : i32, i32, i32
  }
  func.func @transform_4(%arg0: i32) -> (i32, i32) {
    %c0_i32 = arith.constant 0 : i32
    %c0_i32_0 = arith.constant 0 : i32
    %c0_i32_1 = arith.constant 0 : i32
    return %c0_i32, %c0_i32_0 : i32, i32
  }
  func.func @transform_5(%arg0: i32) -> (i32, i32) {
    %c0_i32 = arith.constant 0 : i32
    %c0_i32_0 = arith.constant 0 : i32
    %c0_i32_1 = arith.constant 0 : i32
    return %c0_i32, %c0_i32_0 : i32, i32
  }
  func.func @transform_6(%arg0: i32) -> (i32, i32) {
    %c0_i32 = arith.constant 0 : i32
    %c0_i32_0 = arith.constant 0 : i32
    %c0_i32_1 = arith.constant 0 : i32
    return %c0_i32, %c0_i32_0 : i32, i32
  }
  func.func @transform_7(%arg0: i32) -> (i32, i32) {
    %c0_i32 = arith.constant 0 : i32
    %c0_i32_0 = arith.constant 0 : i32
    %c0_i32_1 = arith.constant 0 : i32
    return %c0_i32, %c0_i32_0 : i32, i32
  }
  func.func @transform_8(%arg0: i32) -> (i32, i32) {
    %c0_i32 = arith.constant 0 : i32
    %c0_i32_0 = arith.constant 0 : i32
    %c0_i32_1 = arith.constant 0 : i32
    return %c0_i32, %c0_i32_0 : i32, i32
  }
  func.func @transform_9(%arg0: i32) -> (i32, i32) {
    %c0_i32 = arith.constant 0 : i32
    %c0_i32_0 = arith.constant 0 : i32
    %c0_i32_1 = arith.constant 0 : i32
    return %c0_i32, %c0_i32_0 : i32, i32
  }
  func.func @transform_10(%arg0: i32) -> (i32, i32) {
    %c0_i32 = arith.constant 0 : i32
    %c0_i32_0 = arith.constant 0 : i32
    %c0_i32_1 = arith.constant 0 : i32
    return %c0_i32, %c0_i32_0 : i32, i32
  }
  func.func @transform_11(%arg0: i32) -> (i32, i32) {
    %c0_i32 = arith.constant 0 : i32
    %c0_i32_0 = arith.constant 0 : i32
    %c0_i32_1 = arith.constant 0 : i32
    return %c0_i32, %c0_i32_0 : i32, i32
  }
}

</mosaic_0001>

<bundles_post_ra>
// kernel: tpu_custom_call.1
= control target key start
LH: loop header
LB: loop body
LE: loop exit
PB: predicated region body
PF: predicated region fallthrough
CT: control target
= control target key end

     0   :  { %vm40_vm0 = vcmask 654336   ;;  %s2566_s23 = smov 8   ;;  %vm43_vm1 = vcmask 650240   ;;  %v2567_v4 = vmov 0.0   ;;  %v2568_v7 = vmov 0   ;;  %s3339_s0 = inlined_call_operand.vmem [shape: f32[2,16,64], index: 0, kind: input, shape index: {}]   ;;  %s3340_s1 = inlined_call_operand.vmem [shape: bf16[3,80,144], index: 1, kind: input, shape index: {}]   ;;  %s3341_s2 = inlined_call_operand.vmem [shape: f32[1,144], index: 2, kind: input, shape index: {}]   ;;  %s3342_s3 = inlined_call_operand.vmem [shape: bf16[3,144,128], index: 3, kind: input, shape index: {}]   ;;  %s3343_s4 = inlined_call_operand.vmem [shape: f32[1,128], index: 4, kind: input, shape index: {}]   ;;  %s3344_s5 = inlined_call_operand.vmem [shape: bf16[64,128], index: 5, kind: input, shape index: {}]   ;;  %s3345_s6 = inlined_call_operand.vmem [shape: f32[1,128], index: 6, kind: input, shape index: {}]   ;;  %s3346_s7 = inlined_call_operand.vmem [shape: f32[128,8], index: 7, kind: input, shape index: {}]   ;;  %s3347_s8 = inlined_call_operand.vmem [shape: f32[8,128], index: 8, kind: input, shape index: {}]   ;;  %s3348_s9 = inlined_call_operand.vmem [shape: f32[1,8], index: 9, kind: input, shape index: {}]   ;;  %s3349_s10 = inlined_call_operand.vmem [shape: f32[1,8], index: 10, kind: input, shape index: {}]   ;;  %s3350_s11 = inlined_call_operand.hbm [shape: f32[32,128], index: 11, kind: output, shape index: {}]  }
   0x1   :  { %v50_v0 = vld [vmem:[%s3339_s0 + $0x10] sm:$0xff]  ;;  %v48_v1 = vld [vmem:[%s3339_s0] sm:$0xff]  ;;  %v51_v2 = vld [vmem:[%s3339_s0 + $0x18] sm:$0xff]  ;;  %45 = vst.msk [vmem:[#allocation2 + $0x18] sm:$0xff] %vm40_vm0, %v2567_v4  ;;  %512 = vmatprep.mubr.bf16.mxu0 %v2568_v7  ;;  %1281 = vmatprep.subr.bf16.mxu1 %v2568_v7 }
   0x2   :  { %60 = vrot.lane.b32.xlu1 %v50_v0, %s2566_s23  ;;  %56 = vrot.lane.b32.xlu0 %v48_v1, %s2566_s23  ;;  %v49_v3 = vld [vmem:[%s3339_s0 + $0x8] sm:$0xff]  ;;  %46 = vst.msk [vmem:[#allocation2 + $0x20] sm:$0xff] %vm40_vm0, %v2567_v4  ;;  %41 = vst.msk [vmem:[#allocation2] sm:$0xff] %vm40_vm0, %v2567_v4  ;;  %v2460_v5 = vld [vmem:[%s3340_s1 + $0x54] ss:$8 sps:$4 sm:$0xff]  }
   0x3   :  { %42 = vst.msk [vmem:[#allocation2 + $0x8] sm:$0xff] %vm40_vm0, %v2567_v4  ;;  %v2462_v6 = vld [vmem:[%s3340_s1 + $0x50] ss:$8 sps:$4 sm:$0xff]   ;;  %v2463_v8 = vld [vmem:[%s3340_s1 + $0x64] ss:$8 sps:$4 sm:$0xff]   ;;  %480 = vmatprep.subr.bf16.mxu0 %v2460_v5 }
   0x4   :  { %47 = vst.msk [vmem:[#allocation2 + $0x28] sm:$0xf] %vm43_vm1, %v2567_v4  ;;  %44 = vst.msk [vmem:[#allocation2 + $0x10] sm:$0xf] %vm43_vm1, %v2567_v4  ;;  %481 = vmatpush1.bf16.msra.mxu0 %v2462_v6  ;;  %v2465_v9 = vld [vmem:[%s3340_s1 + $0x60] ss:$8 sps:$4 sm:$0xff]  }
   0x5   :  { %482 = vmatprep.subr.bf16.mxu0 %v2463_v8  ;;  %v2466_v10 = vld [vmem:[%s3340_s1 + $0x74] ss:$8 sps:$4 sm:$0xff]   ;;  %v2468_v11 = vld [vmem:[%s3340_s1 + $0x70] ss:$8 sps:$4 sm:$0xff]   ;;  %v2469_v12 = vld [vmem:[%s3340_s1 + $0x84] ss:$8 sps:$4 sm:$0xff]  }
   0x6   :  { %62 = vrot.lane.b32.xlu1 %v51_v2, %s2566_s23  ;;  %58 = vrot.lane.b32.xlu0 %v49_v3, %s2566_s23  ;;  %v2471_v13 = vld [vmem:[%s3340_s1 + $0x80] ss:$8 sps:$4 sm:$0xff]   ;;  %v2472_v14 = vld [vmem:[%s3340_s1 + $0x94] ss:$8 sps:$4 sm:$0xff]  }
   0x7   :  { %v2474_v15 = vld [vmem:[%s3340_s1 + $0x90] ss:$8 sps:$4 sm:$0xff]   ;;  %v2479_v16 = vld [vmem:[%s3340_s1 + $0x4] ss:$8 sps:$4 sm:$0xff]  }
   0x8   :  { %483 = vmatpush1.bf16.msra.mxu0 %v2465_v9 }
   0x9   :  { %484 = vmatprep.subr.bf16.mxu0 %v2466_v10 }
   0xc   :  { %485 = vmatpush1.bf16.msra.mxu0 %v2468_v11 }
   0xd   :  { %486 = vmatprep.subr.bf16.mxu0 %v2469_v12 }
  0x10   :  { %487 = vmatpush1.bf16.msra.mxu0 %v2471_v13 }
  0x11   :  { %488 = vmatprep.subr.bf16.mxu0 %v2472_v14 }
  0x14   :  { %489 = vmatpush1.bf16.msra.mxu0 %v2474_v15 }
  0x15   :  { %600 = vmatprep.subr.bf16.mxu0 %v2479_v16 }
  0x16   :  { %16 = vsyncpa [#allocation4], 0  ;;  %v2569_v17 = vmov 1983009808   ;;  %v89_v19 = vlaneseq  ;;  %vm68_vm2 = vcmask 588864   ;;  %vm263_vm3 = vcmask 1040384  }
  0x17   :  { %v87_v18 = vunpack.c.l.s4 %v2569_v17  ;;  %vm264_vm4 = vcmask 1042434   ;;  %vm266_vm6 = vcmask 1044484   ;;  %vm268_vm8 = vcmask 1046534   ;;  %v2488_v35 = vld [vmem:[%s3340_s1 + $0x30] ss:$8 sps:$4 sm:$0xff]  }
  0x18   :  { %v2696_v23 = vshrl.u32 %v89_v19, 7  ;;  %vm265_vm5 = vmor %vm263_vm3, %vm264_vm4  ;;  %vm1168_vm12 = vcmask 1046528   ;;  %vm1274_vm13 = vcmask 130048   ;;  %vm1439_vm14 = vcmask 1045504  }
  0x19   :  { %v88_v22 = vunpack.c.0.s8 %v87_v18  ;;  %vm267_vm7 = vmor %vm265_vm5, %vm266_vm6  ;;  %vm2570_vm15 = vmmov 1   ;;  %vm1664_vm1 = vcmask 523264   ;;  %vm1911_vm3 = vcmask 64512  }
  0x1a   :  { %vm2714_vm9 = vmor %vm267_vm7, %vm268_vm8  ;;  %vm1013_vm11 = vcmp.ge.s32.totalorder %v2696_v23, 1 }
  0x1b   :  { %v2699_v26 = vsub.s32 %v88_v22, %v2696_v23 }
  0x74   :  { %v61_v20 = vpop.permute.xlu1 %60  ;;  %v57_v21 = vpop.permute.xlu0 %56 }
  0x75   :  { %71 = vst.msk [vmem:[#allocation2 + $0x1a] sm:$0xff] %vm68_vm2, %v61_v20  ;;  %69 = vst.msk [vmem:[#allocation2 + $0x2] sm:$0xff] %vm68_vm2, %v57_v21 }
  0x78   :  { %v63_v24 = vpop.permute.xlu1 %62  ;;  %v59_v25 = vpop.permute.xlu0 %58 }
  0x79   :  { %72 = vst.msk [vmem:[#allocation2 + $0x22] sm:$0xff] %vm68_vm2, %v63_v24  ;;  %70 = vst.msk [vmem:[#allocation2 + $0xa] sm:$0xff] %vm68_vm2, %v59_v25  ;;  %vm2572_vm2 = vmmov 0  }
  0x7c   :  { %v73_v27 = vld [vmem:[#allocation2] sm:$0xff]  ;;  %v76_v28 = vld [vmem:[#allocation2 + $0x18] sm:$0xff] }
  0x7d   :  { %v85_v29 = vcombine.high %v73_v27, %v73_v27  ;;  %v2702_v30 = vrot.slane %v73_v27, %v2699_v26  ;;  %v126_v31 = vcombine.high %v76_v28, %v76_v28  ;;  %v2705_v32 = vrot.slane %v76_v28, %v2699_v26 }
  0x7f   :  { %v2708_v33 = vrot.slane %v85_v29, %v2699_v26  ;;  %v2712_v34 = vcombine.high %v2702_v30, %v2702_v30  ;;  %v2104_v36 = vrot.slane %v2702_v30, 9  ;;  %v2720_v37 = vrot.slane %v126_v31, %v2699_v26 }
  0x80   :  { %v74_v38 = vld [vmem:[#allocation2 + $0x8] sm:$0xff]  ;;  %v2722_v39 = vld.sshfl [vmem:[#allocation2 + $0x10] sm:$0x33 pattern:$0x76325410]  ;;  %v77_v40 = vld [vmem:[#allocation2 + $0x20] sm:$0xff]  ;;  %v2726_v41 = vcombine.high %v2705_v32, %v2705_v32 }
  0x81   :  { %v2730_v42 = vcombine.high %v2708_v33, %v2708_v33  ;;  %v102_v43 = vcombine.high %v74_v38, %v74_v38  ;;  %v2733_v44 = vrot.slane %v74_v38, %v2699_v26  ;;  %v272_v45 = vrot.slane %v2712_v34, 7 }
  0x82   :  { %v275_v46 = vrot.slane %v2708_v33, 7  ;;  %v293_v47 = vrot.slane %v2722_v39, 7  ;;  %v2740_v48 = vcombine.high %v2720_v37, %v2720_v37  ;;  %v143_v49 = vcombine.high %v77_v40, %v77_v40 }
  0x83   :  { %v2743_v50 = vrot.slane %v102_v43, %v2699_v26  ;;  %v2747_v51 = vcombine.high %v2733_v44, %v2733_v44  ;;  %v273_v52 = vsel %vm2714_vm9, %v2104_v36, %v272_v45  ;;  %v274_v53 = vrot.slane %v272_v45, 2 }
  0x84   :  { %v277_v54 = vrot.slane %v275_v46, 2  ;;  %v278_v55 = vrot.slane %v2730_v42, 7  ;;  %v281_v56 = vrot.slane %v2733_v44, 7  ;;  %v2754_v57 = vrot.slane %v77_v40, %v2699_v26 }
  0x85   :  { %v2758_v58 = vcombine.high %v2743_v50, %v2743_v50  ;;  %v276_v59 = vsel %vm2714_vm9, %v274_v53, %v275_v46  ;;  %v284_v60 = vrot.slane %v2747_v51, 7  ;;  %v287_v61 = vrot.slane %v2743_v50, 7 }
  0x86   :  { %v279_v62 = vsel %vm2714_vm9, %v277_v54, %v278_v55  ;;  %v280_v63 = vrot.slane %v278_v55, 2  ;;  %v283_v0 = vrot.slane %v281_v56, 2  ;;  %v326_v1 = vcombine.low %v273_v52, %v276_v59 }
  0x87   :  { %v286_v2 = vrot.slane %v284_v60, 2  ;;  %v289_v3 = vrot.slane %v287_v61, 2  ;;  %v290_v5 = vrot.slane %v2758_v58, 7  ;;  %v2768_v6 = vrot.slane %v143_v49, %v2699_v26 }
  0x88   :  { %v282_v8 = vsel %vm2714_vm9, %v280_v63, %v281_v56  ;;  %v285_v9 = vsel %vm2714_vm9, %v283_v0, %v284_v60  ;;  %v334_v10 = vrot.slane %v326_v1, %v2699_v26  ;;  %v2777_v11 = vcombine.high %v2754_v57, %v2754_v57  ;;  %v2803_v49 = vld.sshfl [vmem:[#allocation2 + $0x28] sm:$0x33 pattern:$0x76325410] }
  0x89   :  { %v288_v12 = vsel %vm2714_vm9, %v286_v2, %v287_v61  ;;  %v291_v13 = vsel %vm2714_vm9, %v289_v3, %v290_v5  ;;  %v292_v14 = vrot.slane %v290_v5, 2  ;;  %v327_v15 = vcombine.low %v279_v62, %v282_v8  ;;  %v2477_v62 = vld [vmem:[%s3340_s1] ss:$8 sps:$4 sm:$0xff]   ;;  %v2482_v5 = vld [vmem:[%s3340_s1 + $0x14] ss:$8 sps:$4 sm:$0xff]  }
  0x8a   :  { %v343_v16 = vcombine.low %v285_v9, %v288_v12  ;;  %v2785_v17 = vcombine.high %v2768_v6, %v2768_v6  ;;  %v261_v18 = vcombine.high %v2722_v39, %v2722_v39  ;;  %v295_v19 = vrot.slane %v293_v47, 2 }
  0x8b   :  { %v294_v20 = vsel %vm2714_vm9, %v292_v14, %v293_v47  ;;  %v341_v21 = vrot.slane %v327_v15, %v2699_v26  ;;  %v2105_v22 = vrot.slane %v2705_v32, 9  ;;  %v300_v24 = vrot.slane %v2726_v41, 7 }
  0x8c   :  { %v344_v25 = vcombine.low %v291_v13, %v294_v20  ;;  %v351_v27 = vrot.slane %v343_v16, %v2699_v26  ;;  %v296_v28 = vrot.slane %v261_v18, 7  ;;  %v303_v29 = vrot.slane %v2720_v37, 7 }
  0x8d   :  { %v342_v31 = vcombine.low %v334_v10, %v341_v21  ;;  %v301_v36 = vsel %vm2714_vm9, %v2105_v22, %v300_v24  ;;  %v302_v38 = vrot.slane %v300_v24, 2  ;;  %v306_v40 = vrot.slane %v2740_v48, 7  ;;  %v2480_v21 = vld [vmem:[%s3340_s1 + $0x10] ss:$8 sps:$4 sm:$0xff]  }
  0x8e   :  { %v358_v43 = vrot.slane %v344_v25, %v2699_v26  ;;  %v297_v45 = vsel %vm2714_vm9, %v295_v19, %v296_v28  ;;  %v305_v46 = vrot.slane %v303_v29, 2  ;;  %v309_v47 = vrot.slane %v2754_v57, 7 }
  0x8f   :  { %v304_v52 = vsel %vm2714_vm9, %v302_v38, %v303_v29  ;;  %v308_v53 = vrot.slane %v306_v40, 2  ;;  %v312_v54 = vrot.slane %v2777_v11, 7  ;;  %v315_v55 = vrot.slane %v2768_v6, 7 }
  0x90   :  { %v359_v56 = vcombine.low %v351_v27, %v358_v43  ;;  %v307_v59 = vsel %vm2714_vm9, %v305_v46, %v306_v40  ;;  %v311_v60 = vrot.slane %v309_v47, 2  ;;  %v318_v61 = vrot.slane %v2785_v17, 7  ;;  %v2487_v27 = vld [vmem:[%s3340_s1 + $0x24] ss:$8 sps:$4 sm:$0xff]   ;;  %v2485_v40 = vld [vmem:[%s3340_s1 + $0x20] ss:$8 sps:$4 sm:$0xff]  }
  0x91   :  { %v310_v63 = vsel %vm2714_vm9, %v308_v53, %v309_v47  ;;  %v314_v0 = vrot.slane %v312_v54, 2  ;;  %v317_v1 = vrot.slane %v315_v55, 2  ;;  %v360_v2 = vcombine.low %v297_v45, %v301_v36  ;;  %v2490_v45 = vld [vmem:[%s3340_s1 + $0x34] ss:$8 sps:$4 sm:$0xff]  }
  0x92   :  { %v407_v3 = vpack.c.bf16 %v359_v56, %v342_v31  ;;  %v313_v8 = vsel %vm2714_vm9, %v311_v60, %v312_v54  ;;  %v361_v9 = vcombine.low %v304_v52, %v307_v59  ;;  %v2824_v10 = vcombine.high %v2803_v49, %v2803_v49  ;;  %v2493_v52 = vld [vmem:[%s3340_s1 + $0x44] ss:$8 sps:$4 sm:$0xff]   ;;  %v2491_v56 = vld [vmem:[%s3340_s1 + $0x40] ss:$8 sps:$4 sm:$0xff]  }
  0x93   :  { %v316_v12 = vsel %vm2714_vm9, %v314_v0, %v315_v55  ;;  %v319_v13 = vsel %vm2714_vm9, %v317_v1, %v318_v61  ;;  %v368_v14 = vrot.slane %v360_v2, %v2699_v26  ;;  %v377_v15 = vcombine.low %v310_v63, %v313_v8 }
  0x94   :  { %2126 = vmatmul.mubr.msk.bf16.vlgmr.msra.gmra.mrb[0].mxu0 %vm40_vm0, %v407_v3  ;;  %v375_v16 = vrot.slane %v361_v9, %v2699_v26  ;;  %v378_v18 = vcombine.low %v316_v12, %v319_v13  ;;  %v320_v19 = vrot.slane %v318_v61, 2  ;;  %v321_v20 = vrot.slane %v2803_v49, 7  ;;  %v2494_v12 = vld [vmem:[%s3340_s1 + $0xa0] ss:$8 sps:$4 sm:$0xff]  }
  0x95   :  { %601 = vmatpush1.bf16.msra.mxu0 %v2477_v62  ;;  %522 = vmatprep.mubr.bf16.mxu0 %v2568_v7  ;;  %v385_v22 = vrot.slane %v377_v15, %v2699_v26  ;;  %v324_v24 = vrot.slane %v2824_v10, 7  ;;  %v185_v53 = vcombine.low %v2743_v50, %v2758_v58  ;;  %v168_v54 = vcombine.low %v2708_v33, %v2730_v42  ;;  %v2496_v62 = vld [vmem:[%s3340_s1 + $0xa4] ss:$8 sps:$4 sm:$0xff]  }
  0x96   :  { %602 = vmatprep.subr.bf16.mxu0 %v2482_v5  ;;  %v392_v25 = vrot.slane %v378_v18, %v2699_v26  ;;  %v323_v28 = vrot.slane %v321_v20, 2  ;;  %v322_v29 = vsel %vm2714_vm9, %v320_v19, %v321_v20  ;;  %v376_v31 = vcombine.low %v368_v14, %v375_v16  ;;  %v2499_v14 = vld [vmem:[%s3340_s1 + $0xb4] ss:$8 sps:$4 sm:$0xff]  }
  0x97   :  { %v184_v55 = vcombine.low %v2733_v44, %v2747_v51  ;;  %v167_v60 = vcombine.low %v2702_v30, %v2712_v34  ;;  %v199_v61 = vrot.slane %v185_v53, %v2699_v26  ;;  %v182_v63 = vrot.slane %v168_v54, %v2699_v26 }
  0x98   :  { %v393_v36 = vcombine.low %v385_v22, %v392_v25  ;;  %v325_v38 = vsel %vm2714_vm9, %v323_v28, %v324_v24  ;;  %v218_v30 = vcombine.low %v2740_v48, %v2754_v57  ;;  %v219_v3 = vcombine.low %v2777_v11, %v2768_v6  ;;  %v2500_v24 = vld [vmem:[%s3340_s1 + $0xc0] ss:$8 sps:$4 sm:$0xff]  }
  0x99   :  { %603 = vmatpush1.bf16.msra.mxu0 %v2480_v21  ;;  %v394_v46 = vcombine.low %v322_v29, %v325_v38  ;;  %v192_v0 = vrot.slane %v184_v55, %v2699_v26  ;;  %v175_v1 = vrot.slane %v167_v60, %v2699_v26  ;;  %v201_v8 = vcombine.low %v2722_v39, %v2705_v32  ;;  %v2502_v21 = vld [vmem:[%s3340_s1 + $0xc4] ss:$8 sps:$4 sm:$0xff]   ;;  %v2503_v29 = vld [vmem:[%s3340_s1 + $0xd0] ss:$8 sps:$4 sm:$0xff]  }
  0x9a   :  { %v408_v43 = vpack.c.bf16 %v393_v36, %v376_v31  ;;  %604 = vmatprep.subr.bf16.mxu0 %v2487_v27  ;;  %v202_v9 = vcombine.low %v2726_v41, %v2720_v37  ;;  %v226_v15 = vrot.slane %v218_v30, %v2699_v26  ;;  %v233_v16 = vrot.slane %v219_v3, %v2699_v26  ;;  %v2497_v41 = vld [vmem:[%s3340_s1 + $0xb0] ss:$8 sps:$4 sm:$0xff]   ;;  %v2505_v27 = vld [vmem:[%s3340_s1 + $0xd4] ss:$8 sps:$4 sm:$0xff]   ;;  %v2508_v36 = vld [vmem:[%s3340_s1 + $0xe4] ss:$8 sps:$4 sm:$0xff]  }
  0x9b   :  { %v401_v47 = vrot.slane %v394_v46, %v2699_v26  ;;  %v200_v2 = vcombine.low %v192_v0, %v199_v61  ;;  %v183_v5 = vcombine.low %v175_v1, %v182_v63  ;;  %v209_v18 = vrot.slane %v201_v8, %v2699_v26  ;;  %v2510_v60 = vld [vmem:[%s3342_s3 + $0x90] sm:$0xff]   ;;  %v2513_v61 = vld [vmem:[%s3342_s3 + $0x58] sm:$0xff]   ;;  %v2515_v63 = vld [vmem:[%s3342_s3 + $0x60] sm:$0xff]  }
  0x9c   :  { %2127 = vmatmul.mubr.msk.bf16.gmra.mrb[4].mxu0 %vm40_vm0, %v408_v43  ;;  %v216_v19 = vrot.slane %v202_v9, %v2699_v26  ;;  %v234_v20 = vcombine.low %v226_v15, %v233_v16  ;;  %v235_v28 = vcombine.low %v2785_v17, %v2803_v49  ;;  %v679_v38 = vcombine.low %v2758_v58, %v2722_v39  ;;  %v2516_v0 = vld [vmem:[%s3342_s3 + $0xa8] sm:$0xff]   ;;  %v2519_v30 = vld [vmem:[%s3342_s3 + $0x70] sm:$0xff]   ;;  %v2520_v3 = vld [vmem:[%s3342_s3 + $0xb8] sm:$0xff]  }
  0x9d   :  { %605 = vmatpush1.bf16.msra.mxu0 %v2485_v40  ;;  %532 = vmatprep.mubr.bf16.mxu0 %v2568_v7  ;;  %v409_v59 = vpack.c.bf16 %v401_v47, %v401_v47  ;;  %v248_v13 = vpack.c.bf16 %v200_v2, %v183_v5  ;;  %v662_v40 = vcombine.low %v2730_v42, %v2733_v44  ;;  %v2517_v1 = vld [vmem:[%s3342_s3 + $0x68] sm:$0xff]   ;;  %v2518_v2 = vld [vmem:[%s3342_s3 + $0xb0] sm:$0xff]   ;;  %v2521_v5 = vld [vmem:[%s3342_s3 + $0x78] sm:$0xff]  }
  0x9e   :  { %606 = vmatprep.subr.bf16.mxu0 %v2490_v45  ;;  %v217_v22 = vcombine.low %v209_v18, %v216_v19  ;;  %v242_v31 = vrot.slane %v235_v28, %v2699_v26  ;;  %v678_v43 = vcombine.low %v2747_v51, %v2743_v50  ;;  %v2506_v45 = vld [vmem:[%s3340_s1 + $0xe0] ss:$8 sps:$4 sm:$0xff]   ;;  %v693_v47 = vrot.slane %v679_v38, %v2699_v26 }
  0x9f   :  { %v676_v58 = vrot.slane %v662_v40, %v2699_v26  ;;  %v712_v51 = vcombine.low %v2754_v57, %v2777_v11  ;;  %v2142_v54 = vcombine.high %v2722_v39, %v2705_v32  ;;  %v2522_v8 = vld [vmem:[%s3342_s3 + $0xc0] sm:$0xff]   ;;  %v894_v28 = vsub.s32 1, %v2696_v23 }
  0xa0   :  { %v249_v25 = vpack.c.bf16 %v234_v20, %v217_v22  ;;  %v250_v46 = vpack.c.bf16 %v242_v31, %v242_v31  ;;  %v686_v42 = vrot.slane %v678_v43, %v2699_v26  ;;  %v2523_v9 = vld [vmem:[%s3342_s3 + $0x80] sm:$0xff]   ;;  %v3038_v22 = vsub.s32 0, %v2696_v23 }
  0xa1   :  { %607 = vmatpush1.bf16.msra.mxu0 %v2488_v35  ;;  %v661_v35 = vcombine.low %v2712_v34, %v2708_v33  ;;  %v713_v33 = vcombine.low %v2768_v6, %v2785_v17  ;;  %v720_v55 = vrot.slane %v712_v51, %v2699_v26  ;;  %v703_v6 = vrot.slane %v2142_v54, %v2699_v26 }
  0xa2   :  { %608 = vmatprep.subr.bf16.mxu0 %v2493_v52  ;;  %v694_v50 = vcombine.low %v686_v42, %v693_v47  ;;  %v696_v52 = vcombine.low %v2720_v37, %v2740_v48  ;;  %v729_v37 = vcombine.low %v2803_v49, %v2824_v10  ;;  %v2509_v48 = vld [vmem:[%s3342_s3 + $0x48] sm:$0xff]   ;;  %v2511_v49 = vld [vmem:[%s3342_s3 + $0x50] sm:$0xff]   ;;  %v2512_v10 = vld [vmem:[%s3342_s3 + $0x98] sm:$0xff]  }
  0xa3   :  { %v669_v44 = vrot.slane %v661_v35, %v2699_v26  ;;  %1282 = vmatpush1.bf16.msra.mxu1 %v2509_v48 }
  0xa4   :  { %2128 = vmatmul.mubr.msk.bf16.gmra.mrb[8].mxu0 %vm40_vm0, %v409_v59  ;;  %v710_v57 = vrot.slane %v696_v52, %v2699_v26  ;;  %v736_v32 = vrot.slane %v729_v37, %v2699_v26  ;;  %1283 = vmatprep.subr.bf16.mxu1 %v2568_v7  ;;  %v3056_v52 = vadd.s32 16, %v2696_v23  ;;  %v1619_v23 = vld [vmem:[%s3339_s0] sm:$0xff] }
  0xa5   :  { %609 = vmatpush1.bf16.msra.mxu0 %v2491_v56  ;;  %632 = vmatprep.mubr.bf16.mxu0 %v2568_v7  ;;  %v677_v34 = vcombine.low %v669_v44, %v676_v58  ;;  %v727_v56 = vrot.slane %v713_v33, %v2699_v26 }
  0xa6   :  { %815 = vmatprep.subr.bf16.mxu0 %v2496_v62  ;;  %v711_v17 = vcombine.low %v703_v6, %v710_v57  ;;  %v744_v39 = vpack.c.bf16 %v736_v32, %v736_v32  ;;  %v2514_v62 = vld [vmem:[%s3342_s3 + $0xa0] sm:$0xff]   ;;  %vm1018_vm10 = vcmp.lt.s32.totalorder %v3056_v52, 17 }
  0xa7   :  { %v742_v53 = vpack.c.bf16 %v694_v50, %v677_v34  ;;  %v728_v11 = vcombine.low %v720_v55, %v727_v56  ;;  %1284 = vmatpush1.bf16.msra.mxu1 %v2511_v49 }
  0xa8   :  { %1285 = vmatprep.subr.bf16.mxu1 %v2568_v7 }
  0xa9   :  { %v743_v59 = vpack.c.bf16 %v728_v11, %v711_v17 }
  0xab   :  { %1286 = vmatpush1.bf16.msra.mxu1 %v2513_v61 }
  0xac   :  { %2139 = vmatmul.mubr.msk.bf16.vlgmr.msra.gmra.mrb[0].mxu0 %vm40_vm0, %v248_v13  ;;  %1287 = vmatprep.subr.bf16.mxu1 %v2568_v7  ;;  %v2525_v13 = vld [vmem:[%s3342_s3 + $0x88] sm:$0xff]  }
  0xad   :  { %816 = vmatpush1.bf16.msra.mxu0 %v2494_v12  ;;  %642 = vmatprep.mubr.bf16.mxu0 %v2568_v7  ;;  %v2524_v12 = vld [vmem:[%s3342_s3 + $0xc8] sm:$0xff]  }
  0xae   :  { %817 = vmatprep.subr.bf16.mxu0 %v2499_v14  ;;  %v2526_v14 = vld [vmem:[%s3342_s3 + $0xd0] sm:$0xff]  }
  0xaf   :  { %1288 = vmatpush1.bf16.msra.mxu1 %v2515_v63 }
  0xb0   :  { %1289 = vmatprep.subr.bf16.mxu1 %v2568_v7 }
  0xb1   :  { %818 = vmatpush1.bf16.msra.mxu0 %v2497_v41 }
  0xb2   :  { %819 = vmatprep.subr.bf16.mxu0 %v2502_v21 }
  0xb3   :  { %1290 = vmatpush1.bf16.msra.mxu1 %v2517_v1 }
  0xb4   :  { %2140 = vmatmul.mubr.msk.bf16.gmra.mrb[4].mxu0 %vm40_vm0, %v249_v25  ;;  %1291 = vmatprep.subr.bf16.mxu1 %v2568_v7 }
  0xb5   :  { %820 = vmatpush1.bf16.msra.mxu0 %v2500_v24  ;;  %652 = vmatprep.mubr.bf16.mxu0 %v2568_v7 }
  0xb6   :  { %821 = vmatprep.subr.bf16.mxu0 %v2505_v27  ;;  %v886_v27 = vld [vmem:[%s3341_s2] sm:$0x3] }
  0xb7   :  { %1292 = vmatpush1.bf16.msra.mxu1 %v2519_v30  ;;  %v3047_v31 = vrot.slane %v886_v27, %v3038_v22 }
  0xb8   :  { %1293 = vmatprep.subr.bf16.mxu1 %v2568_v7 }
  0xb9   :  { %822 = vmatpush1.bf16.msra.mxu0 %v2503_v29 }
  0xba   :  { %823 = vmatprep.subr.bf16.mxu0 %v2508_v36  ;;  %v3049_v36 = vrot.slane %v886_v27, %v894_v28 }
  0xbb   :  { %1294 = vmatpush1.bf16.msra.mxu1 %v2521_v5 }
  0xbc   :  { %2141 = vmatmul.mubr.msk.bf16.gmra.mrb[12].mxu0 %vm40_vm0, %v250_v46  ;;  %1295 = vmatprep.subr.bf16.mxu1 %v2568_v7 }
  0xbd   :  { %824 = vmatpush1.bf16.msra.mxu0 %v2506_v45  ;;  %847 = vmatprep.mubr.bf16.mxu0 %v2568_v7 }
  0xbe   :  { %1551 = vmatprep.subr.bf16.mxu0 %v2568_v7 }
  0xbf   :  { %1296 = vmatpush1.bf16.msra.mxu1 %v2523_v9 }
  0xc0   :  { %1297 = vmatprep.subr.bf16.mxu1 %v2568_v7 }
  0xc3   :  { %1298 = vmatpush1.bf16.msra.mxu1 %v2525_v13 }
  0xc4   :  { %2163 = vmatmul.mubr.msk.bf16.vlgmr.msra.gmra.mrb[0].mxu0 %vm40_vm0, %v742_v53  ;;  %1390 = vmatprep.subr.bf16.mxu1 %v2568_v7 }
  0xc5   :  { %857 = vmatprep.mubr.bf16.mxu0 %v2568_v7  ;;  %1552 = vmatpush1.bf16.msra.mxu0 %v2510_v60 }
  0xc6   :  { %1553 = vmatprep.subr.bf16.mxu0 %v2568_v7 }
  0xc9   :  { %1554 = vmatpush1.bf16.msra.mxu0 %v2512_v10 }
  0xca   :  { %1555 = vmatprep.subr.bf16.mxu0 %v2568_v7 }
  0xcc   :  { %2164 = vmatmul.mubr.msk.bf16.gmra.mrb[4].mxu0 %vm40_vm0, %v743_v59 }
  0xcd   :  { %867 = vmatprep.mubr.bf16.mxu0 %v2568_v7  ;;  %1556 = vmatpush1.bf16.msra.mxu0 %v2514_v62 }
  0xce   :  { %1557 = vmatprep.subr.bf16.mxu0 %v2568_v7 }
  0xd1   :  { %1558 = vmatpush1.bf16.msra.mxu0 %v2516_v0 }
  0xd2   :  { %1559 = vmatprep.subr.bf16.mxu0 %v2568_v7 }
  0xd4   :  { %2165 = vmatmul.mubr.msk.bf16.gmra.mrb[16].mxu0 %vm40_vm0, %v744_v39  ;;  %vm2205_vm0 = vmpackc.low %vm2570_vm15, %vm1013_vm11 }
  0xd5   :  { %1560 = vmatpush1.bf16.msra.mxu0 %v2518_v2 }
  0xd6   :  { %1561 = vmatprep.subr.bf16.mxu0 %v2568_v7 }
  0xd9   :  { %1562 = vmatpush1.bf16.msra.mxu0 %v2520_v3 }
  0xda   :  { %1563 = vmatprep.subr.bf16.mxu0 %v2568_v7 }
  0xdd   :  { %1564 = vmatpush1.bf16.msra.mxu0 %v2522_v8 }
  0xde   :  { %1565 = vmatprep.subr.bf16.mxu0 %v2568_v7 }
  0xe1   :  { %1566 = vmatpush1.bf16.msra.mxu0 %v2524_v12 }
  0xe2   :  { %1567 = vmatprep.subr.bf16.mxu0 %v2568_v7 }
  0xe5   :  { %1568 = vmatpush1.bf16.msra.mxu0 %v2526_v14 }
 0x177   :  { %v534_v15 = vpop.f32.mrb[8].mxu0 }
 0x178   :  { %v536_v16 = vpop.f32.mrb[9].mxu0 }
 0x179   :  { %v538_v18 = vpop.f32.mrb[10].mxu0 }
 0x17a   :  { %v539_v19 = vpop.f32.mrb[11].mxu0 }
 0x18f   :  { %v654_v41 = vpop.f32.mrb[12].mxu0 }
 0x190   :  { %v3035_v20 = vadd.f32 %v654_v41, %v534_v15  ;;  %v656_v21 = vpop.f32.mrb[13].mxu0 }
 0x191   :  { %v3040_v24 = vadd.f32 %v656_v21, %v536_v16  ;;  %v658_v25 = vpop.f32.mrb[14].mxu0 }
 0x192   :  { %v659_v29 = vpop.f32.mrb[15].mxu0 }
 0x197   :  { %v849_v38 = vpop.f32.mrb[0].mxu0 }
 0x198   :  { %v898_v40 = vadd.f32 %v3047_v31, %v849_v38  ;;  %v851_v43 = vpop.f32.mrb[1].mxu0 }
 0x199   :  { %v899_v45 = vadd.f32 %v3049_v36, %v851_v43  ;;  %v853_v46 = vpop.f32.mrb[2].mxu0 }
 0x19a   :  { %v908_v35 = vmax.f32 %v898_v40, 0.0  ;;  %v900_v47 = vadd.f32 %v3047_v31, %v853_v46  ;;  %v855_v58 = vpop.f32.mrb[3].mxu0 }
 0x19b   :  { %v909_v42 = vmax.f32 %v899_v45, 0.0  ;;  %v901_v44 = vadd.f32 %v3049_v36, %v855_v58 }
 0x19c   :  { %v910_v50 = vmax.f32 %v900_v47, 0.0 }
 0x19d   :  { %v928_v51 = vcombine.low %v908_v35, %v909_v42  ;;  %v929_v33 = vcombine.high %v908_v35, %v909_v42  ;;  %v911_v34 = vmax.f32 %v901_v44, 0.0 }
 0x19f   :  { %v936_v53 = vrot.slane %v928_v51, %v2699_v26  ;;  %v943_v54 = vrot.slane %v929_v33, %v2699_v26  ;;  %v946_v55 = vcombine.low %v910_v50, %v911_v34  ;;  %v947_v56 = vcombine.high %v910_v50, %v911_v34  ;;  %v859_v57 = vpop.f32.mrb[4].mxu0 }
 0x1a0   :  { %v902_v6 = vadd.f32 %v3047_v31, %v859_v57  ;;  %v861_v11 = vpop.f32.mrb[5].mxu0 }
 0x1a1   :  { %v944_v17 = vcombine.high %v936_v53, %v936_v53  ;;  %v945_v59 = vcombine.high %v943_v54, %v943_v54  ;;  %v954_v37 = vrot.slane %v946_v55, %v2699_v26  ;;  %v961_v32 = vrot.slane %v947_v56, %v2699_v26  ;;  %v863_v39 = vpop.f32.mrb[6].mxu0 }
 0x1a2   :  { %v912_v48 = vmax.f32 %v902_v6, 0.0  ;;  %v903_v60 = vadd.f32 %v3049_v36, %v861_v11  ;;  %v904_v49 = vadd.f32 %v3047_v31, %v863_v39  ;;  %v865_v10 = vpop.f32.mrb[7].mxu0 }
 0x1a3   :  { %v1022_v61 = vcombine.low %v936_v53, %v944_v17  ;;  %v1023_v62 = vcombine.low %v943_v54, %v945_v59  ;;  %v962_v63 = vcombine.high %v954_v37, %v954_v37  ;;  %v963_v0 = vcombine.high %v961_v32, %v961_v32 }
 0x1a4   :  { %v913_v1 = vmax.f32 %v903_v60, 0.0  ;;  %v914_v2 = vmax.f32 %v904_v49, 0.0  ;;  %v905_v30 = vadd.f32 %v3049_v36, %v865_v10 }
 0x1a5   :  { %v1030_v3 = vrot.slane %v1022_v61, %v2699_v26  ;;  %v1037_v5 = vrot.slane %v1023_v62, %v2699_v26  ;;  %v1040_v8 = vcombine.low %v954_v37, %v962_v63  ;;  %v1041_v9 = vcombine.low %v961_v32, %v963_v0 }
 0x1a6   :  { %v964_v12 = vcombine.low %v912_v48, %v913_v1  ;;  %v965_v13 = vcombine.high %v912_v48, %v913_v1  ;;  %v915_v14 = vmax.f32 %v905_v30, 0.0 }
 0x1a7   :  { %v3070_v15 = vcombine.low %v1030_v3, %v1037_v5  ;;  %v1039_v16 = vcombine.high %v1030_v3, %v1037_v5  ;;  %v1048_v18 = vrot.slane %v1040_v8, %v2699_v26  ;;  %v1055_v19 = vrot.slane %v1041_v9, %v2699_v26  ;;  %v869_v41 = vpop.f32.mrb[16].mxu0 }
 0x1a8   :  { %v972_v21 = vrot.slane %v964_v12, %v2699_v26  ;;  %v979_v25 = vrot.slane %v965_v13, %v2699_v26  ;;  %v982_v27 = vcombine.low %v914_v2, %v915_v14  ;;  %v983_v28 = vcombine.high %v914_v2, %v915_v14  ;;  %v871_v29 = vpop.f32.mrb[17].mxu0 }
 0x1a9   :  { %v3076_v38 = vcombine.low %v1048_v18, %v1055_v19  ;;  %v3078_v40 = vcombine.high %v1048_v18, %v1055_v19  ;;  %v884_v43 = vadd.f32 %v869_v41, %v3035_v20  ;;  %v885_v45 = vadd.f32 %v871_v29, %v3040_v24  ;;  %v873_v46 = vpop.f32.mrb[18].mxu0  ;;  %v2527_v29 = vld [vmem:[%s3342_s3] sm:$0xff]  }
 0x1aa   :  { %v980_v35 = vcombine.high %v972_v21, %v972_v21  ;;  %v981_v47 = vcombine.high %v979_v25, %v979_v25  ;;  %v1064_v58 = vrot.slane %v972_v21, %v2699_v26  ;;  %v990_v42 = vrot.slane %v982_v27, %v2699_v26  ;;  %v874_v44 = vpop.f32.mrb[19].mxu0 }
 0x1ab   :  { %v2206_v50 = vpack.c.bf16 %v3076_v38, %v3070_v15  ;;  %v906_v51 = vadd.f32 %v3047_v31, %v884_v43  ;;  %v997_v20 = vrot.slane %v983_v28, %v2699_v26  ;;  %v1441_v53 = vrot.slane %v3076_v38, 2 }
 0x1ac   :  { %v1065_v33 = vcombine.high %v1064_v58, %v1064_v58  ;;  %v1066_v34 = vcombine.low %v980_v35, %v979_v25  ;;  %v998_v24 = vcombine.high %v990_v42, %v990_v42  ;;  %v1126_v54 = vsel %vm1018_vm10, %v1064_v58, 0.0 }
 0x1ad   :  { %v1067_v55 = vcombine.low %v981_v47, %v990_v42  ;;  %v916_v56 = vmax.f32 %v906_v51, 0.0  ;;  %v907_v11 = vadd.f32 %v3049_v36, %v885_v45  ;;  %v3095_v31 = vsel %vm1013_vm11, %v1039_v16, 0.0 }
 0x1ae   :  { %v1074_v57 = vrot.slane %v1066_v34, %v2699_v26  ;;  %v1084_v6 = vcombine.low %v998_v24, %v997_v20  ;;  %v1127_v59 = vsel %vm1018_vm10, %v1065_v33, 0.0  ;;  %v1172_v37 = vrot.slane %v3095_v31, 1 }
 0x1af   :  { %v1081_v17 = vrot.slane %v1067_v55, %v2699_v26  ;;  %v1173_v32 = vrot.slane %v3078_v40, 1  ;;  %v1446_v39 = vrot.slane %v1126_v54, 2  ;;  %v917_v48 = vmax.f32 %v907_v11, 0.0 }
 0x1b0   :  { %v1177_v60 = vrot.slane %v1127_v59, 1  ;;  %v1443_v49 = vrot.slane %v3095_v31, 2  ;;  %v1448_v62 = vrot.slane %v1127_v59, 2  ;;  %v1444_v1 = vrot.slane %v3078_v40, 2 }
 0x1b1   :  { %v3103_v10 = vcombine.low %v1074_v57, %v1081_v17  ;;  %v1083_v36 = vcombine.high %v1074_v57, %v1081_v17  ;;  %v1174_v61 = vsel %vm1168_vm12, %v1172_v37, %v1173_v32  ;;  %v1000_v63 = vcombine.low %v916_v56, %v917_v48 }
 0x1b2   :  { %v1178_v0 = vsel %vm1168_vm12, %v1173_v32, %v1177_v60  ;;  %v1122_v2 = vsel %vm1013_vm11, %v3070_v15, 0.0  ;;  %v999_v30 = vcombine.high %v997_v20, %v997_v20  ;;  %v1170_v8 = vrot.slane %v3076_v38, 1  ;;  %v2539_v15 = vld [vmem:[%s3344_s5 + $0x18] sm:$0xff]   ;;  %v1621_v38 = vld [vmem:[%s3339_s0 + $0x10] sm:$0xff] }
 0x1b3   :  { %v1198_v3 = vpack.c.bf16 %v1178_v0, %v1174_v61  ;;  %v1169_v5 = vrot.slane %v1122_v2, 1  ;;  %v1007_v9 = vrot.slane %v1000_v63, %v2699_v26  ;;  %v1445_v12 = vsel %vm1439_vm14, %v1443_v49, %v1444_v1 }
 0x1b4   :  { %v1449_v13 = vsel %vm1439_vm14, %v1444_v1, %v1448_v62  ;;  %v1175_v14 = vrot.slane %v1126_v54, 1  ;;  %v1440_v19 = vrot.slane %v1122_v2, 2  ;;  %v1447_v41 = vsel %vm1439_vm14, %v1441_v53, %v1446_v39  ;;  %v2529_v39 = vld [vmem:[%s3342_s3 + $0x10] sm:$0xff]  }
 0x1b5   :  { %2193 = vmatprep.mubr.msk.bf16.mxu1 %vm1274_vm13, %v1198_v3  ;;  %v1469_v16 = vpack.c.bf16 %v1449_v13, %v1445_v12  ;;  %v1171_v18 = vsel %vm1168_vm12, %v1169_v5, %v1170_v8  ;;  %v3120_v21 = vsel %vm1013_vm11, %v1083_v36, 0.0  ;;  %v1008_v25 = vcombine.high %v1007_v9, %v1007_v9  ;;  %v2530_v5 = vld [vmem:[%s3342_s3 + $0x18] sm:$0xff]   ;;  %v2535_v13 = vld [vmem:[%s3342_s3 + $0x40] sm:$0xff]  }
 0x1b6   :  { %v1085_v27 = vcombine.low %v999_v30, %v1007_v9  ;;  %v1176_v28 = vsel %vm1168_vm12, %v1170_v8, %v1175_v14  ;;  %v1092_v43 = vrot.slane %v1084_v6, %v2699_v26  ;;  %v1442_v46 = vsel %vm1439_vm14, %v1440_v19, %v1441_v53  ;;  %v2532_v8 = vld [vmem:[%s3342_s3 + $0x28] sm:$0xff]   ;;  %v2533_v9 = vld [vmem:[%s3342_s3 + $0x30] sm:$0xff]   ;;  %v2534_v12 = vld [vmem:[%s3342_s3 + $0x38] sm:$0xff]  }
 0x1b7   :  { %2239 = vmatprep.mubr.msk.bf16.mxu0 %vm1274_vm13, %v1469_v16  ;;  %v1197_v45 = vpack.c.bf16 %v1176_v28, %v1171_v18  ;;  %v1108_v47 = vrot.slane %v1008_v25, %v2699_v26  ;;  %v1468_v58 = vpack.c.bf16 %v1447_v41, %v1442_v46  ;;  %v1128_v42 = vsel %vm1013_vm11, %v3103_v10, 0.0  ;;  %v2536_v14 = vld [vmem:[%s3344_s5] sm:$0xff]   ;;  %v2537_v16 = vld [vmem:[%s3344_s5 + $0x8] sm:$0xff]  }
 0x1b8   :  { %v1099_v35 = vrot.slane %v1085_v27, %v2699_v26  ;;  %v1182_v44 = vrot.slane %v3120_v21, 1  ;;  %v1453_v51 = vrot.slane %v3120_v21, 2  ;;  %v1135_v33 = vpack.c.bf16 %v3078_v40, %v3095_v31  ;;  %v2528_v26 = vld [vmem:[%s3342_s3 + $0x8] sm:$0xff]   ;;  %v1746_v46 = vld [vmem:[%s3346_s7 + $0x20] sm:$0xff] }
 0x1b9   :  { %1314 = vmatmul.mubr.bf16.vlgmr.msra.gmra.mrb[0].mxu1 %v1197_v45  ;;  %v1109_v24 = vcombine.high %v1108_v47, %v1108_v47  ;;  %1584 = vmatmul.mubr.bf16.vlgmr.msra.gmra.mrb[20].mxu0 %v1468_v58  ;;  %v1132_v53 = vsel %vm1018_vm10, %v1108_v47, 0.0  ;;  %v1179_v54 = vrot.slane %v1128_v42, 1  ;;  %v1450_v56 = vrot.slane %v1128_v42, 2  ;;  %v1620_v18 = vld [vmem:[%s3339_s0 + $0x8] sm:$0xff]  ;;  %v1748_v58 = vld [vmem:[%s3346_s7 + $0x30] sm:$0xff]  ;;  %v1749_v42 = vld [vmem:[%s3346_s7 + $0x38] sm:$0xff] }
 0x1ba   :  { %v3138_v34 = vcombine.low %v1092_v43, %v1099_v35  ;;  %v3140_v20 = vcombine.high %v1092_v43, %v1099_v35  ;;  %1391 = vmatpush1.bf16.msra.mxu1 %v2527_v29  ;;  %v1185_v55 = vrot.slane %v1132_v53, 1  ;;  %v1456_v40 = vrot.slane %v1132_v53, 2  ;;  %v1743_v25 = vld [vmem:[%s3346_s7 + $0x8] sm:$0xff]  ;;  %v1744_v29 = vld [vmem:[%s3346_s7 + $0x10] sm:$0xff]  ;;  %v1745_v43 = vld [vmem:[%s3346_s7 + $0x18] sm:$0xff] }
 0x1bb   :  { %1392 = vmatprep.subr.bf16.mxu1 %v2568_v7  ;;  %v1133_v57 = vsel %vm1018_vm10, %v1109_v24, 0.0  ;;  %v1623_v19 = vpack.c.bf16 %v1620_v18, %v1619_v23  ;;  %v2571_v27 = vmov 0.0|0.0   ;;  %v2391_v45 = vpack.c.bf16 %v1745_v43, %v1744_v29  ;;  %v1747_v35 = vld [vmem:[%s3346_s7 + $0x28] sm:$0xff]  ;;  %v1753_v24 = vld [vmem:[%s3346_s7 + $0x58] sm:$0xff]  ;;  %v1754_v53 = vld [vmem:[%s3346_s7 + $0x60] sm:$0xff] }
 0x1bc   :  { %v1183_v6 = vrot.slane %v3140_v20, 1  ;;  %v1454_v11 = vrot.slane %v3140_v20, 2  ;;  %v1180_v31 = vrot.slane %v3138_v34, 1  ;;  %v1187_v17 = vrot.slane %v1133_v57, 1  ;;  %2411 = vmatprep.subr.bf16.mxu0 %v2571_v27 }
 0x1bd   :  { %v1458_v59 = vrot.slane %v1133_v57, 2  ;;  %v1451_v37 = vrot.slane %v3138_v34, 2  ;;  %v1137_v32 = vpack.c.bf16 %v3140_v20, %v3120_v21  ;;  %v2210_v30 = vpack.c.bf16 %v3138_v34, %v3103_v10  ;;  %v2531_v10 = vld [vmem:[%s3342_s3 + $0x20] sm:$0xff]   ;;  %v1752_v20 = vld [vmem:[%s3346_s7 + $0x50] sm:$0xff] }
 0x1be   :  { %1393 = vmatpush1.bf16.msra.mxu1 %v2528_v26  ;;  %v1184_v52 = vsel %vm1168_vm12, %v1182_v44, %v1183_v6  ;;  %v1455_v48 = vsel %vm1439_vm14, %v1453_v51, %v1454_v11  ;;  %v1181_v60 = vsel %vm1168_vm12, %v1179_v54, %v1180_v31  ;;  %v1186_v49 = vsel %vm1168_vm12, %v1180_v31, %v1185_v55  ;;  %v1742_v21 = vld [vmem:[%s3346_s7] sm:$0xff]  ;;  %v1755_v54 = vld [vmem:[%s3346_s7 + $0x68] sm:$0xff] }
 0x1bf   :  { %1394 = vmatprep.subr.bf16.mxu1 %v2568_v7  ;;  %v1188_v36 = vsel %vm1168_vm12, %v1183_v6, %v1187_v17  ;;  %v1459_v61 = vsel %vm1439_vm14, %v1454_v11, %v1458_v59  ;;  %v1199_v62 = vpack.c.bf16 %v1186_v49, %v1181_v60  ;;  %v1452_v63 = vsel %vm1439_vm14, %v1450_v56, %v1451_v37  ;;  %v1750_v44 = vld [vmem:[%s3346_s7 + $0x40] sm:$0xff]  ;;  %v1756_v56 = vld [vmem:[%s3346_s7 + $0x70] sm:$0xff] }
 0x1c0   :  { %v1200_v0 = vpack.c.bf16 %v1188_v36, %v1184_v52  ;;  %v1471_v1 = vpack.c.bf16 %v1459_v61, %v1455_v48  ;;  %v1457_v2 = vsel %vm1439_vm14, %v1451_v37, %v1456_v40  ;;  %v2388_v28 = vpack.c.bf16 %v1743_v25, %v1742_v21  ;;  %v1757_v40 = vld [vmem:[%s3346_s7 + $0x78] sm:$0xff] }
 0x1c1   :  { %v1470_v3 = vpack.c.bf16 %v1457_v2, %v1452_v63  ;;  %v2394_v47 = vpack.c.bf16 %v1747_v35, %v1746_v46  ;;  %v2397_v51 = vpack.c.bf16 %v1749_v42, %v1748_v58  ;;  %v2403_v26 = vpack.c.bf16 %v1753_v24, %v1752_v20 }
 0x1c2   :  { %1395 = vmatpush1.bf16.msra.mxu1 %v2529_v39  ;;  %2194 = vmatprep.mubr.msk.bf16.mxu1 %vm1274_vm13, %v1200_v0  ;;  %v2406_v55 = vpack.c.bf16 %v1755_v54, %v1754_v53  ;;  %v2409_v57 = vpack.c.bf16 %v1757_v40, %v1756_v56 }
 0x1c3   :  { %1396 = vmatprep.subr.bf16.mxu1 %v2568_v7  ;;  %2240 = vmatprep.mubr.msk.bf16.mxu0 %vm1274_vm13, %v1471_v1 }
 0x1c4   :  { %1322 = vmatmul.mubr.bf16.gmra.mrb[4].mxu1 %v1199_v62  ;;  %1592 = vmatmul.mubr.bf16.gmra.mrb[24].mxu0 %v1470_v3 }
 0x1c5   :  { %2204 = vmatprep.mubr.msk.bf16.mxu1 %vm1274_vm13, %v1135_v33  ;;  %2413 = vmatpush3.bf16.msra.mxu0 %v2388_v28  ;;  %v1751_v33 = vld [vmem:[%s3346_s7 + $0x48] sm:$0xff] }
 0x1c6   :  { %1397 = vmatpush1.bf16.msra.mxu1 %v2530_v5  ;;  %2414 = vmatprep.subr.bf16.mxu0 %v2571_v27  ;;  %v2400_v34 = vpack.c.bf16 %v1751_v33, %v1750_v44 }
 0x1c7   :  { %1398 = vmatprep.subr.bf16.mxu1 %v2568_v7  ;;  %2374 = vmatprep.mubr.msk.f32.mxu0 %vm2572_vm2, %v2567_v4 }
 0x1c9   :  { %2416 = vmatpush3.bf16.msra.mxu0 %v2391_v45 }
 0x1ca   :  { %1399 = vmatpush1.bf16.msra.mxu1 %v2531_v10  ;;  %2417 = vmatprep.subr.bf16.mxu0 %v2571_v27 }
 0x1cb   :  { %1400 = vmatprep.subr.bf16.mxu1 %v2568_v7 }
 0x1cd   :  { %2419 = vmatpush3.bf16.msra.mxu0 %v2394_v47 }
 0x1ce   :  { %1401 = vmatpush1.bf16.msra.mxu1 %v2532_v8  ;;  %2420 = vmatprep.subr.bf16.mxu0 %v2571_v27 }
 0x1cf   :  { %1402 = vmatprep.subr.bf16.mxu1 %v2568_v7 }
 0x1d1   :  { %2422 = vmatpush3.bf16.msra.mxu0 %v2397_v51 }
 0x1d2   :  { %1403 = vmatpush1.bf16.msra.mxu1 %v2533_v9  ;;  %2423 = vmatprep.subr.bf16.mxu0 %v2571_v27 }
 0x1d3   :  { %1404 = vmatprep.subr.bf16.mxu1 %v2568_v7 }
 0x1d5   :  { %2425 = vmatpush3.bf16.msra.mxu0 %v2400_v34 }
 0x1d6   :  { %1405 = vmatpush1.bf16.msra.mxu1 %v2534_v12  ;;  %2426 = vmatprep.subr.bf16.mxu0 %v2571_v27 }
 0x1d7   :  { %1406 = vmatprep.subr.bf16.mxu1 %v2568_v7  ;;  %v2538_v7 = vld [vmem:[%s3344_s5 + $0x10] sm:$0xff]  }
 0x1d9   :  { %2428 = vmatpush3.bf16.msra.mxu0 %v2403_v26 }
 0x1da   :  { %1407 = vmatpush1.bf16.msra.mxu1 %v2535_v13  ;;  %2429 = vmatprep.subr.bf16.mxu0 %v2571_v27 }
 0x1db   :  { %2295 = vmatprep.subr.bf16.mxu1 %v2536_v14 }
 0x1dd   :  { %2207 = vmatmul.mubr.msk.bf16.vlgmr.msra.gmra.mrb[8].mxu1 %vm2205_vm0, %v2206_v50  ;;  %v1622_v50 = vld [vmem:[%s3339_s0 + $0x18] sm:$0xff]  ;;  %2431 = vmatpush3.bf16.msra.mxu0 %v2406_v55 }
 0x1de   :  { %2208 = vmatprep.mubr.msk.bf16.mxu1 %vm1274_vm13, %v1137_v32  ;;  %2296 = vmatpush3.bf16.msra.mxu1 %v2536_v14  ;;  %v1624_v41 = vpack.c.bf16 %v1622_v50, %v1621_v38 }
 0x1df   :  { %2297 = vmatprep.subr.bf16.mxu1 %v2537_v16  ;;  %2432 = vmatprep.subr.bf16.mxu0 %v2571_v27 }
 0x1e1   :  { %2434 = vmatpush3.bf16.msra.mxu0 %v2409_v57 }
 0x1e2   :  { %2298 = vmatpush3.bf16.msra.mxu1 %v2537_v16 }
 0x1e3   :  { %2299 = vmatprep.subr.bf16.mxu1 %v2538_v7 }
 0x1e5   :  { %2211 = vmatmul.mubr.msk.bf16.gmra.mrb[12].mxu1 %vm2205_vm0, %v2210_v30 }
 0x1e6   :  { %2300 = vmatpush3.bf16.msra.mxu1 %v2538_v7  ;;  %2303 = vmatprep.mubr.msk.bf16.mxu1 %vm1664_vm1, %v1623_v19  ;;  %v2242_v19 = vld [vmem:[%s3345_s6] ss:$0 sm:$0xff] }
 0x1e7   :  { %2301 = vmatprep.subr.bf16.mxu1 %v2539_v15 }
 0x1ea   :  { %2302 = vmatpush3.bf16.msra.mxu1 %v2539_v15 }
 0x1eb   :  { %2387 = vmatprep.subr.bf16.mxu1 %v2571_v27 }
 0x1ed   :  { %2304 = vmatmul.mubr.msk.bf16.vlgmr.msra.gmra.mrb[16].mxu1 %vm1664_vm1, %v1624_v41 }
 0x1ee   :  { %2389 = vmatpush3.bf16.msra.mxu1 %v2388_v28  ;;  %2339 = vmatprep.mubr.msk.f32.mxu1 %vm2572_vm2, %v2567_v4 }
 0x1ef   :  { %2390 = vmatprep.subr.bf16.mxu1 %v2571_v27 }
 0x1f2   :  { %2392 = vmatpush3.bf16.msra.mxu1 %v2391_v45 }
 0x1f3   :  { %2393 = vmatprep.subr.bf16.mxu1 %v2571_v27 }
 0x1f6   :  { %2395 = vmatpush3.bf16.msra.mxu1 %v2394_v47 }
 0x1f7   :  { %2396 = vmatprep.subr.bf16.mxu1 %v2571_v27 }
 0x1fa   :  { %2398 = vmatpush3.bf16.msra.mxu1 %v2397_v51 }
 0x1fb   :  { %2399 = vmatprep.subr.bf16.mxu1 %v2571_v27 }
 0x1fe   :  { %2401 = vmatpush3.bf16.msra.mxu1 %v2400_v34 }
 0x1ff   :  { %2402 = vmatprep.subr.bf16.mxu1 %v2571_v27 }
 0x202   :  { %2404 = vmatpush3.bf16.msra.mxu1 %v2403_v26 }
 0x203   :  { %2405 = vmatprep.subr.bf16.mxu1 %v2571_v27 }
 0x206   :  { %2407 = vmatpush3.bf16.msra.mxu1 %v2406_v55 }
 0x207   :  { %2408 = vmatprep.subr.bf16.mxu1 %v2571_v27 }
 0x20a   :  { %2410 = vmatpush3.bf16.msra.mxu1 %v2409_v57 }
 0x20b   :  { %2377 = vmatprep.subr.mxu1 %v2567_v4 }
 0x28c   :  { %v1315_v6 = vpop.f32.mrb[0].mxu1  ;;  %v1585_v11 = vpop.f32.mrb[20].mxu0 }
 0x28d   :  { %v1317_v31 = vpop.f32.mrb[1].mxu1  ;;  %v1587_v17 = vpop.f32.mrb[21].mxu0 }
 0x28e   :  { %v1318_v59 = vpop.f32.mrb[2].mxu1  ;;  %v1588_v37 = vpop.f32.mrb[22].mxu0 }
 0x28f   :  { %v1320_v32 = vpop.f32.mrb[3].mxu1  ;;  %v1590_v39 = vpop.f32.mrb[23].mxu0 }
 0x297   :  { %v1323_v52 = vpop.f32.mrb[4].mxu1  ;;  %v1593_v48 = vpop.f32.mrb[24].mxu0 }
 0x298   :  { %v1325_v60 = vpop.f32.mrb[5].mxu1  ;;  %v1595_v49 = vpop.f32.mrb[25].mxu0 }
 0x299   :  { %v1326_v36 = vpop.f32.mrb[6].mxu1  ;;  %v1596_v61 = vpop.f32.mrb[26].mxu0  ;;  %v1903_v49 = vld [vmem:[%s3348_s9] sm:$0x1] }
 0x29a   :  { %v1328_v62 = vpop.f32.mrb[7].mxu1  ;;  %v1598_v63 = vpop.f32.mrb[27].mxu0 }
 0x29b   :  { %v1907_v62 = vld [vmem:[%s3349_s10] sm:$0x1] }
 0x2b0   :  { %v1424_v0 = vpop.f32.mrb[8].mxu1 }
 0x2b1   :  { %v1425_v1 = vadd.f32 %v1424_v0, %v1315_v6  ;;  %v1426_v2 = vpop.f32.mrb[9].mxu1 }
 0x2b2   :  { %v1427_v30 = vpop.f32.mrb[10].mxu1 }
 0x2b3   :  { %v3280_v3 = vadd.f32 %v1585_v11, %v1425_v1  ;;  %v1428_v5 = vadd.f32 %v1427_v30, %v1318_v59  ;;  %v1429_v10 = vpop.f32.mrb[11].mxu1  ;;  %v1910_v11 = vld [vmem:[%s3347_s8] sm:$0xff] }
 0x2b4   :  { %v2241_v1 = vld [vmem:[%s3343_s4] ss:$0 sm:$0xff]  ;;  %s2573_s4 = smov [#allocation3]  }
 0x2b5   :  { %v3282_v8 = vadd.f32 %v1588_v37, %v1428_v5  ;;  %v1611_v10 = vadd.f32 %v2241_v1, %v3280_v3  ;;  %s2091_s9 = sshll.u32 %s2573_s4, 4  ;;  %s2092_s9 = int_to_ptr.vmem [resolvable:$true] %s2091_s9 }
 0x2b6   :  { %s2542_s10 = scalar_lea.vmem %s2092_s9, 512  ;;  %p2547_p1 = scmp.lt.s32.totalorder %s2092_s9, %s2092_s9 }
 0x2b7   :  { %p2543_p0 = scmp.ne.s32.totalorder %s2092_s9, %s2542_s10  ;;  %p2548_p2 = scmp.lt.s32.totalorder %s2542_s10, %s2542_s10 }
 0x2b8   :  { %v1432_v9 = vpop.f32.mrb[12].mxu1 }
 0x2b9   :  { %v1433_v12 = vadd.f32 %v1432_v9, %v1323_v52  ;;  %v1434_v13 = vpop.f32.mrb[13].mxu1  ;;  %v1612_v9 = vadd.f32 %v2241_v1, %v3282_v8  ;;  %p2549_p3 = por %p2548_p2, %p2547_p1 }
 0x2ba   :  { %v1435_v14 = vpop.f32.mrb[14].mxu1 }
 0x2bb   :  { %v3284_v16 = vadd.f32 %v1593_v48, %v1433_v12  ;;  %v1436_v7 = vadd.f32 %v1435_v14, %v1326_v36  ;;  %v1437_v23 = vpop.f32.mrb[15].mxu1  ;;  %p2550_p4 = pnand %p2549_p3, %p2543_p0 }
 0x2bd   :  { %v3286_v18 = vadd.f32 %v1596_v61, %v1436_v7  ;;  %v1613_v12 = vadd.f32 %v2241_v1, %v3284_v16 }
 0x2bf   :  { %v1614_v13 = vadd.f32 %v2241_v1, %v3286_v18 }
 0x2c0   :  { %v2305_v15 = vpop.f32.mrb[16].mxu1 }
 0x2c1   :  { %v1705_v38 = vpop.f32.mrb[17].mxu1  ;;  %v3293_v25 = vadd.f32 %v2305_v15, %v2242_v19  ;;  %v1618_v3 = vmax.f32 %v1614_v13, 0.0 }
 0x2c2   :  { %v3291_v50 = vadd.f32 %v2242_v19, %v1705_v38  ;;  %v2306_v41 = vpop.f32.mrb[18].mxu1 }
 0x2c3   :  { %v1708_v21 = vpop.f32.mrb[19].mxu1  ;;  %v1717_v29 = vadd.f32 %v2306_v41, %v2242_v19  ;;  %v1731_v46 = vmul.f32 %v3293_v25, %v3293_v25  ;;  %v1615_v41 = vmax.f32 %v1611_v10, 0.0 }
 0x2c4   :  { %v1709_v27 = vadd.f32 %v2242_v19, %v1708_v21  ;;  %v1729_v28 = vmul.f32 %v3291_v50, %v3291_v50  ;;  %v1616_v21 = vmax.f32 %v1612_v9, 0.0 }
 0x2c5   :  { %v1732_v58 = vmul.f32 %v1717_v29, %v1717_v29 }
 0x2c6   :  { %v1720_v43 = vadd.f32 %v1709_v27, %v3291_v50  ;;  %v1730_v45 = vmul.f32 %v1709_v27, %v1709_v27 }
 0x2c8   :  { %v1721_v35 = vadd.f32 %v1720_v43, %v3293_v25  ;;  %v1733_v47 = vadd.f32 %v1730_v45, %v1729_v28  ;;  %v1617_v28 = vmax.f32 %v1613_v12, 0.0 }
 0x2ca   :  { %v1722_v42 = vadd.f32 %v1721_v35, %v1717_v29  ;;  %v1734_v44 = vadd.f32 %v1733_v47, %v1731_v46 }
 0x2cc   :  { %v1723_v51 = vrot.slane %v1722_v42, 4  ;;  %v1735_v33 = vadd.f32 %v1734_v44, %v1732_v58 }
 0x2ce   :  { %v1724_v34 = vadd.f32 %v1723_v51, %v1722_v42  ;;  %v1736_v20 = vrot.slane %v1735_v33, 4 }
 0x2d0   :  { %v1737_v24 = vadd.f32 %v1736_v20, %v1735_v33  ;;  %v1725_v26 = vrot.slane %v1724_v34, 2 }
 0x2d2   :  { %v1738_v53 = vrot.slane %v1737_v24, 2  ;;  %v1726_v54 = vadd.f32 %v1725_v26, %v1724_v34 }
 0x2d4   :  { %v1727_v55 = vrot.slane %v1726_v54, 1  ;;  %v1739_v56 = vadd.f32 %v1738_v53, %v1737_v24 }
 0x2d6   :  { %v1728_v40 = vadd.f32 %v1727_v55, %v1726_v54  ;;  %v1740_v57 = vrot.slane %v1739_v56, 1 }
 0x2d8   :  { %2340 = vmatmul.mubr.f32.vlgmr.msra.gmra.mrb[20].mxu1 %v1728_v40  ;;  %v1741_v6 = vadd.f32 %v1740_v57, %v1739_v56 }
 0x2d9   :  { %2379 = vmatprep.mubr.msk.f32.mxu1 %vm2572_vm2, %v2567_v4  ;;  %2378 = vmatpush3.msra.mxu1 %v1910_v11 }
 0x2da   :  { %2375 = vmatmul.mubr.f32.vlgmr.msra.gmra.mrb[28].mxu0 %v1741_v6  ;;  %2382 = vmatprep.subr.mxu1 %v2567_v4 }
 0x3ab   :  { %v1824_v31 = vpop.f32.mrb[20].mxu1 }
 0x3ac   :  { %v1899_v17 = vmul.f32 0.001953125, %v1824_v31  ;;  %v2341_v59 = vpop.f32.mrb[21].mxu1 }
 0x3ad   :  { %v1894_v37 = vpop.f32.mrb[28].mxu0 }
 0x3ae   :  { %v1901_v32 = vmul.f32 %v1899_v17, %v1899_v17  ;;  %v1900_v39 = vmul.f32 0.001953125, %v1894_v37  ;;  %v2376_v52 = vpop.f32.mrb[29].mxu0 }
 0x3b0   :  { %v1902_v48 = vsub.f32 %v1900_v39, %v1901_v32 }
 0x3b2   :  { %v1904_v60 = vadd.f32 1e-05, %v1902_v48 }
 0x3b4   :  { %2540 = vrsqrt.f32 %v1904_v60 }
 0x3be   :  { %v2541_v36 = vpop.eup %2540 }
 0x3bf   :  { %v1906_v61 = vmul.f32 %v2541_v36, %v1903_v49 }
 0x3c1   :  { %2380 = vmatmul.mubr.msk.f32.vlgmr.msra.gmra.mrb[22].mxu1 %vm1911_vm3, %v1906_v61  ;;  %v1908_v63 = vmul.f32 %v1906_v61, %v1899_v17 }
 0x3c2   :  { %2383 = vmatpush3.msra.mxu1 %v1910_v11  ;;  %2384 = vmatprep.mubr.msk.f32.mxu1 %vm2572_vm2, %v2567_v4 }
 0x3c3   :  { %v1909_v0 = vsub.f32 %v1907_v62, %v1908_v63 }
 0x3c5   :  { %2385 = vmatmul.mubr.msk.f32.vlgmr.msra.gmra.mrb[24].mxu1 %vm1911_vm3, %v1909_v0 }
 0x494   :  { %v1981_v2 = vpop.f32.mrb[22].mxu1 }
 0x495   :  { %v2061_v30 = vrot.slane %v1981_v2, %v3038_v22  ;;  %v2381_v5 = vpop.f32.mrb[23].mxu1 }
 0x497   :  { %v2062_v4 = vmul.f32 %v2061_v30, %v3291_v50  ;;  %v2063_v7 = vmul.f32 %v2061_v30, %v1709_v27  ;;  %v2064_v23 = vmul.f32 %v2061_v30, %v3293_v25  ;;  %v2065_v19 = vmul.f32 %v2061_v30, %v1717_v29 }
 0x498   :  { %v2054_v14 = vpop.f32.mrb[24].mxu1 }
 0x499   :  { %v2069_v15 = vrot.slane %v2054_v14, %v3038_v22  ;;  %v2386_v38 = vpop.f32.mrb[25].mxu1 }
 0x49b   :  { %v2070_v43 = vadd.f32 %v2069_v15, %v2062_v4  ;;  %v2071_v8 = vadd.f32 %v2069_v15, %v2063_v7  ;;  %v2072_v45 = vadd.f32 %v2069_v15, %v2064_v23  ;;  %v2073_v16 = vadd.f32 %v2069_v15, %v2065_v19 }
 0x49d   :  { %v2074_v18 = vadd.f32 %v2070_v43, %v1615_v41  ;;  %v2075_v50 = vadd.f32 %v2071_v8, %v1616_v21  ;;  %v2076_v46 = vadd.f32 %v2072_v45, %v1617_v28  ;;  %v2077_v27 = vadd.f32 %v2073_v16, %v1618_v3 }
 0x49f   :  { %v2078_v35 = vmax.f32 %v2074_v18, 0.0  ;;  %v2079_v25 = vmax.f32 %v2075_v50, 0.0  ;;  %v2080_v29 = vmax.f32 %v2076_v46, 0.0  ;;  %v2081_v47 = vmax.f32 %v2077_v27, 0.0 }
 0x4a1   :  { %2082 = vst [vmem:[#allocation3] sm:$0xff] %v2078_v35  ;;  %2083 = vst [vmem:[#allocation3 + $0x8] sm:$0xff] %v2079_v25 }
 0x4a2   :  { %2084 = vst [vmem:[#allocation3 + $0x10] sm:$0xff] %v2080_v29  ;;  %2085 = vst [vmem:[#allocation3 + $0x18] sm:$0xff] %v2081_v47 }
 0x4a3   :  { %2553 = shalt.err (!%p2550_p4)
}
 0x4a4   :  { %s2554_s19 = scalar_lea.hbm %s3350_s11, 512 }
 0x4a5   :  { %p2555_p5 = scmp.ne.s32.totalorder %s3350_s11, %s2554_s19  ;;  %p2558_p6 = scmp.lt.u32.totalorder %s2554_s19, %s3350_s11 }
 0x4a7   :  { %p2560_p7 = pnand %p2558_p6, %p2555_p5 }
 0x4a9   :  { %2563 = shalt.err (!%p2560_p7)
}
 0x4aa   :  { %s2574_s25 = smov 128  }
 0x4ab   :  { %2097 = dma.vmem_to_hbm [thread:$0]  %s2092_s9, 512, %s3350_s11, [#allocation4], %s2574_s25, %s2574_s25, %s2566_s23  }
 0x4ac   :  { %2564 = dma.done.wait [#allocation4], 512  }
 0x4ad   :  { %2565 = vsyncadd [#allocation4], 4294966784 }
 0x4ae   :  { %2101 = vsyncpa [#allocation4], 1 }

</bundles_post_ra>
